<compile_context>
chip_gen: v6e
topology: v6e:2x2x1
jax: 0.10.0
libtpu: 0.0.40
codegen_flags: <defaults>
</compile_context>

<pallas_src>
import functools
import math

import jax
import jax.numpy as jnp
from jax.experimental import pallas as pl
from jax.experimental.pallas import tpu as pltpu


# ----------------------------------------------------------------------------
# In-kernel helpers
# ----------------------------------------------------------------------------
def _layer_norm(x, gamma, beta, eps=1e-5):
    mu = jnp.mean(x, axis=-1, keepdims=True)
    var = jnp.mean((x - mu) ** 2, axis=-1, keepdims=True)
    return (x - mu) * jax.lax.rsqrt(var + eps) * gamma + beta


# ----------------------------------------------------------------------------
# Fused kernel: all encoder layers, activations resident in VMEM
# ----------------------------------------------------------------------------
def fused_layers_kernel(
    x_ref,                      # (Bt, S, D)     f32 embedded input block
    wqkv_ref, bqkv_ref,         # (1, H, D, 3Dh) bf16 / (1, H, 1, 3Dh) f32
    wo_ref, bo_ref,             # (1, H, Dh, D)  bf16 / (1, 1, D) f32
    g1_ref, be1_ref,            # (1, 1, D)      f32
    w1_ref, b1_ref,             # (1, D, F)      bf16 / (1, 1, F) f32
    w2_ref, b2_ref,             # (1, F, D)      bf16 / (1, 1, D) f32
    g2_ref, be2_ref,            # (1, 1, D)      f32
    o_ref,                      # (Bt, S, D)     f32 final hidden states
    h_scr,                      # VMEM (Bt, S, D) f32 resident activations
    *,
    num_heads: int,
):
    l = pl.program_id(1)

    @pl.when(l == 0)
    def _():
        h_scr[...] = x_ref[...]

    Bt, S, D = x_ref.shape
    H = num_heads
    Dh = D // H

    # Causal mask built in-kernel (free VPU iota/compare; no HBM read).
    row = jax.lax.broadcasted_iota(jnp.int32, (S, S), 0)
    col = jax.lax.broadcasted_iota(jnp.int32, (S, S), 1)
    causal = col <= row

    # Hoist per-layer weight loads out of the batch-row loop.
    wqkv = wqkv_ref[0]          # (H, D, 3Dh) bf16
    bqkv = bqkv_ref[0]          # (H, 1, 3Dh) f32
    wo = wo_ref[0]              # (H, Dh, D)  bf16
    bo = bo_ref[0]              # (1, D)
    g1, be1 = g1_ref[0], be1_ref[0]
    w1, b1 = w1_ref[0], b1_ref[0]
    w2, b2 = w2_ref[0], b2_ref[0]
    g2, be2 = g2_ref[0], be2_ref[0]

    for b in range(Bt):                              # static unrolled loop
        x = h_scr[b]                                 # (S, D) f32
        xb = x.astype(jnp.bfloat16)
        xh = jnp.broadcast_to(xb, (H, S, D))         # single broadcast operand

        # --- fused QKV projection (scale already folded into wq/bq) ---
        qkv = jnp.einsum("hsd,hdk->hsk", xh, wqkv,
                         preferred_element_type=jnp.float32) + bqkv   # (H,S,3Dh)
        q = qkv[..., 0 * Dh:1 * Dh]
        k = qkv[..., 1 * Dh:2 * Dh]
        v = qkv[..., 2 * Dh:3 * Dh]

        # --- attention scores + causal softmax ---
        s = jnp.einsum("hsd,htd->hst", q.astype(jnp.bfloat16),
                       k.astype(jnp.bfloat16),
                       preferred_element_type=jnp.float32)            # (H,S,S)
        s = jnp.where(causal, s, -1e30)
        s = s - jnp.max(s, axis=-1, keepdims=True)
        p = jnp.exp(s)
        p = p * pl.reciprocal(jnp.sum(p, axis=-1, keepdims=True), approx=True)

        # --- context + output projection (summed over heads) ---
        ctx = jnp.einsum("hst,htd->hsd", p.astype(jnp.bfloat16),
                         v.astype(jnp.bfloat16),
                         preferred_element_type=jnp.float32)          # (H,S,Dh)
        attn = jnp.einsum("hsd,hdk->hsk", ctx.astype(jnp.bfloat16), wo,
                          preferred_element_type=jnp.float32)         # (H,S,D)
        attn = jnp.sum(attn, axis=0) + bo                             # (S, D)

        # --- residual + LayerNorm1 (post-norm) ---
        y = _layer_norm(x + attn, g1, be1)

        # --- feed-forward (ReLU) ---
        h1 = jnp.dot(y.astype(jnp.bfloat16), w1,
                     preferred_element_type=jnp.float32) + b1
        h1 = jnp.maximum(h1, 0.0)
        ff = jnp.dot(h1.astype(jnp.bfloat16), w2,
                     preferred_element_type=jnp.float32) + b2

        # --- residual + LayerNorm2, write back resident activation ---
        h_scr[b] = _layer_norm(y + ff, g2, be2)

    @pl.when(l == pl.num_programs(1) - 1)
    def _():
        o_ref[...] = h_scr[...]


# ----------------------------------------------------------------------------
# Epilogue kernel: vocab projection tiled over (batch-block, vocab-block)
# ----------------------------------------------------------------------------
def output_proj_kernel(h_ref, w_ref, b_ref, o_ref):
    Bt, S, D = h_ref.shape
    h = h_ref[...].reshape(Bt * S, D).astype(jnp.bfloat16)
    out = jnp.dot(h, w_ref[...], preferred_element_type=jnp.float32) + b_ref[...]
    o_ref[...] = out.reshape(Bt, S, -1)


# ----------------------------------------------------------------------------
# Wrappers
# ----------------------------------------------------------------------------
def _pick_block_b(B, max_bt=8):
    bt = min(B, max_bt)
    while B % bt:
        bt -= 1
    return bt


def run_fused_layers(x, packed, num_heads, block_b=None):
    B, S, D = x.shape
    L = packed["wqkv"].shape[0]
    Bt = block_b or _pick_block_b(B)
    nB = B // Bt
    F = packed["w1"].shape[-1]

    names = ("wqkv", "bqkv", "wo", "bo", "g1", "be1",
             "w1", "b1", "w2", "b2", "g2", "be2")
    weights = [packed[n] for n in names]

    def per_layer_spec(arr):
        nd = arr.ndim
        return pl.BlockSpec((1,) + arr.shape[1:],
                            lambda g, l, _n=nd: (l,) + (0,) * (_n - 1))

    # vmem_limit = double-buffered weight + activation blocks + scratch + temps.
    act_bytes = Bt * S * D * 4
    wblock_bytes = sum(w.size * w.dtype.itemsize for w in weights) // L
    tmp_bytes = 2 * num_heads * S * S * 4 + Bt * S * max(F, 3 * D) * 4
    vmem_limit = 2 * (wblock_bytes + 2 * act_bytes) + act_bytes + tmp_bytes + (8 << 20)
    vmem_limit = int(min(max(vmem_limit, 16 << 20), 64 << 20))

    in_specs = [pl.BlockSpec((Bt, S, D), lambda g, l: (g, 0, 0))]
    in_specs += [per_layer_spec(w) for w in weights]
    # TODO(synk): on v5e, if weight DMA is exposed, add pipeline_mode=pl.Buffered(3)
    # to the w1/w2 specs; on v7x with B==1 add a second parallel split (query
    # blocks) so both TensorCores are fed.

    kern = functools.partial(fused_layers_kernel, num_heads=num_heads)
    return pl.pallas_call(
        kern,
        out_shape=jax.ShapeDtypeStruct((B, S, D), jnp.float32),
        grid=(nB, L),
        in_specs=in_specs,
        out_specs=pl.BlockSpec((Bt, S, D), lambda g, l: (g, 0, 0)),
        scratch_shapes=[pltpu.VMEM((Bt, S, D), jnp.float32)],
        compiler_params=pltpu.CompilerParams(
            dimension_semantics=("parallel", "arbitrary"),
            vmem_limit_bytes=vmem_limit),
    )(x, *weights)


def run_output_projection(h, w_out, b_out, block_b=None, block_v=512):
    B, S, D = h.shape
    Vp = w_out.shape[1]
    Bt = block_b or _pick_block_b(B)
    Vt = math.gcd(Vp, block_v)            # Vp is a multiple of 128 => Vt >= 128
    return pl.pallas_call(
        output_proj_kernel,
        out_shape=jax.ShapeDtypeStruct((B, S, Vp), jnp.float32),
        grid=(B // Bt, Vp // Vt),
        in_specs=[pl.BlockSpec((Bt, S, D), lambda g, v: (g, 0, 0)),
                  pl.BlockSpec((D, Vt), lambda g, v: (0, v)),
                  pl.BlockSpec((1, Vt), lambda g, v: (0, v))],
        out_specs=pl.BlockSpec((Bt, S, Vt), lambda g, v: (g, 0, v)),
        compiler_params=pltpu.CompilerParams(
            dimension_semantics=("parallel", "parallel")),
    )(h, w_out, b_out)


# ----------------------------------------------------------------------------
# Parameter init (PyTorch-like packed layout) and packing for the kernels
# ----------------------------------------------------------------------------
def init_params(key, vocab_size, embed_dim, hidden_dim, num_layers, seq_length):
    keys = iter(jax.random.split(key, 8 + 12 * num_layers))

    def nrm(shape, scale=0.02):
        return scale * jax.random.normal(next(keys), shape, dtype=jnp.float32)

    params = {
        "embedding": nrm((vocab_size, embed_dim), 1.0),
        "pos_encoding": nrm((seq_length, embed_dim), 1.0),
        "w_out": nrm((embed_dim, vocab_size)),
        "b_out": jnp.zeros((1, vocab_size), jnp.float32),
        "layers": [],
    }
    for _ in range(num_layers):
        params["layers"].append({
            "wqkv": nrm((embed_dim, 3 * embed_dim)),     # columns = [q | k | v]
            "bqkv": jnp.zeros((1, 3 * embed_dim), jnp.float32),
            "wo": nrm((embed_dim, embed_dim)),
            "bo": jnp.zeros((1, embed_dim), jnp.float32),
            "g1": jnp.ones((1, embed_dim), jnp.float32),
            "be1": jnp.zeros((1, embed_dim), jnp.float32),
            "w1": nrm((embed_dim, hidden_dim)),
            "b1": jnp.zeros((1, hidden_dim), jnp.float32),
            "w2": nrm((hidden_dim, embed_dim)),
            "b2": jnp.zeros((1, embed_dim), jnp.float32),
            "g2": jnp.ones((1, embed_dim), jnp.float32),
            "be2": jnp.zeros((1, embed_dim), jnp.float32),
        })
    return params


def pack_params(params, num_heads):
    """Stack layers along L, fuse per-head Q/K/V into one (L, H, D, 3*Dh)
    weight with 1/sqrt(Dh) folded into the q columns, cast matmul weights to
    bf16, pad vocab to a lane-dense multiple of 128. Done once."""
    D = params["embedding"].shape[1]
    H = num_heads
    Dh = D // H
    layers = params["layers"]
    L = len(layers)
    scale = 1.0 / float(Dh) ** 0.5

    def stack(name):
        return jnp.stack([lyr[name] for lyr in layers], axis=0)

    wqkv = stack("wqkv")                     # (L, D, 3D), columns [q | k | v]
    bqkv = stack("bqkv")[:, 0, :]            # (L, 3D)
    wo = stack("wo")                         # (L, D, D)

    def split_w(w):                          # (L, D, D) -> (L, H, D, Dh)
        return w.reshape(L, D, H, Dh).transpose(0, 2, 1, 3)

    def split_b(b):                          # (L, D) -> (L, H, 1, Dh)
        return b.reshape(L, H, Dh)[:, :, None, :]

    wq = split_w(wqkv[:, :, 0 * D:1 * D]) * scale    # fold 1/sqrt(Dh) into q
    wk = split_w(wqkv[:, :, 1 * D:2 * D])
    wv = split_w(wqkv[:, :, 2 * D:3 * D])
    bq = split_b(bqkv[:, 0 * D:1 * D]) * scale
    bk = split_b(bqkv[:, 1 * D:2 * D])
    bv = split_b(bqkv[:, 2 * D:3 * D])

    packed = {
        "wqkv": jnp.concatenate([wq, wk, wv], axis=-1).astype(jnp.bfloat16),  # (L,H,D,3Dh)
        "bqkv": jnp.concatenate([bq, bk, bv], axis=-1),                       # (L,H,1,3Dh)
        "wo": wo.reshape(L, H, Dh, D).astype(jnp.bfloat16),
        "bo": stack("bo"),
        "g1": stack("g1"), "be1": stack("be1"),
        "w1": stack("w1").astype(jnp.bfloat16), "b1": stack("b1"),
        "w2": stack("w2").astype(jnp.bfloat16), "b2": stack("b2"),
        "g2": stack("g2"), "be2": stack("be2"),
    }

    V = params["w_out"].shape[1]
    Vp = ((V + 127) // 128) * 128
    packed["w_out"] = jnp.pad(params["w_out"], ((0, 0), (0, Vp - V))).astype(jnp.bfloat16)
    packed["b_out"] = jnp.pad(params["b_out"], ((0, 0), (0, Vp - V)))
    packed["embedding"] = params["embedding"]
    packed["pos_encoding"] = params["pos_encoding"]
    return packed


def transformer_text_generator_forward(packed, tokens, num_heads, vocab_size):
    # tokens: (B, S) int32
    B, S = tokens.shape
    # TODO(synk): token-id embedding gather stays in plain JAX (data-dependent
    # gather); dropout is identity in eval mode.
    embedded = (jnp.take(packed["embedding"], tokens, axis=0)
                + packed["pos_encoding"][:S]).astype(jnp.float32)
    hidden = run_fused_layers(embedded, packed, num_heads)
    logits_padded = run_output_projection(hidden, packed["w_out"], packed["b_out"])
    return logits_padded[..., :vocab_size]


# ----------------------------------------------------------------------------
# Pure-JAX f32 reference (for correctness check)
# ----------------------------------------------------------------------------
def reference_forward(params, tokens, num_heads):
    B, S = tokens.shape
    D = params["embedding"].shape[1]
    H = num_heads
    Dh = D // H
    h = jnp.take(params["embedding"], tokens, axis=0) + params["pos_encoding"][:S]
    row = jnp.arange(S)[:, None]
    col = jnp.arange(S)[None, :]
    bias = jnp.where(col <= row, 0.0, -1e30).astype(jnp.float32)
    for lyr in params["layers"]:
        qkv = h @ lyr["wqkv"] + lyr["bqkv"]
        q, k, v = qkv[..., :D], qkv[..., D:2 * D], qkv[..., 2 * D:]
        q = q.reshape(B, S, H, Dh).transpose(0, 2, 1, 3)
        k = k.reshape(B, S, H, Dh).transpose(0, 2, 1, 3)
        v = v.reshape(B, S, H, Dh).transpose(0, 2, 1, 3)
        s = jnp.einsum("bhqd,bhkd->bhqk", q, k) / (Dh ** 0.5) + bias
        p = jax.nn.softmax(s, axis=-1)
        ctx = jnp.einsum("bhqk,bhkd->bhqd", p, v)
        ctx = ctx.transpose(0, 2, 1, 3).reshape(B, S, D)
        attn = ctx @ lyr["wo"] + lyr["bo"]
        h = _layer_norm(h + attn, lyr["g1"], lyr["be1"])
        ff = jnp.maximum(h @ lyr["w1"] + lyr["b1"], 0.0) @ lyr["w2"] + lyr["b2"]
        h = _layer_norm(h + ff, lyr["g2"], lyr["be2"])
    return h @ params["w_out"] + params["b_out"]


# ----------------------------------------------------------------------------
if __name__ == "__main__":
    vocab_size = 64
    embed_dim = 32
    num_heads = 4
    hidden_dim = 64
    num_layers = 2
    seq_length = 8
    batch = 2

    key = jax.random.PRNGKey(0)
    pkey, xkey = jax.random.split(key)
    params = init_params(pkey, vocab_size, embed_dim, hidden_dim, num_layers, seq_length)
    packed = pack_params(params, num_heads)
    tokens = jax.random.randint(xkey, (batch, seq_length), 0, vocab_size, dtype=jnp.int32)

    logits = transformer_text_generator_forward(packed, tokens, num_heads, vocab_size)
    logits = jax.block_until_ready(logits)
    assert logits.shape == (batch, seq_length, vocab_size)
    assert bool(jnp.all(jnp.isfinite(logits)))

    ref = reference_forward(params, tokens, num_heads)
    max_err = float(jnp.max(jnp.abs(logits - ref)))
    assert max_err < 5e-2, f"mismatch vs f32 reference: {max_err}"
    print("KERNEL_OK")
</pallas_src>

<mosaic_0001>
module attributes {stable_mosaic.version = 11 : i64} {
  func.func @fused_layers_kernel(%arg0: i32, %arg1: i32, %arg2: memref<2x8x32xf32, #tpu.memory_space<vmem>>, %arg3: memref<1x4x32x24xbf16, #tpu.memory_space<vmem>>, %arg4: memref<1x4x1x24xf32, #tpu.memory_space<vmem>>, %arg5: memref<1x4x8x32xbf16, #tpu.memory_space<vmem>>, %arg6: memref<1x1x32xf32, #tpu.memory_space<vmem>>, %arg7: memref<1x1x32xf32, #tpu.memory_space<vmem>>, %arg8: memref<1x1x32xf32, #tpu.memory_space<vmem>>, %arg9: memref<1x32x64xbf16, #tpu.memory_space<vmem>>, %arg10: memref<1x1x64xf32, #tpu.memory_space<vmem>>, %arg11: memref<1x64x32xbf16, #tpu.memory_space<vmem>>, %arg12: memref<1x1x32xf32, #tpu.memory_space<vmem>>, %arg13: memref<1x1x32xf32, #tpu.memory_space<vmem>>, %arg14: memref<1x1x32xf32, #tpu.memory_space<vmem>>, %arg15: memref<2x8x32xf32, #tpu.memory_space<vmem>>, %arg16: memref<2x8x32xf32, #tpu.memory_space<vmem>>) attributes {dimension_semantics = [#tpu.dimension_semantics<parallel>, #tpu.dimension_semantics<arbitrary>], iteration_bounds = array<i64: 1, 2>, scalar_prefetch = 0 : i64, scratch_operands = 1 : i64, tpu.core_type = #tpu.core_type<tc>, window_params = [{transform_indices = @transform_0, window_bounds = array<i64: 2, 8, 32>}, {transform_indices = @transform_1, window_bounds = array<i64: 1, 4, 32, 24>}, {transform_indices = @transform_2, window_bounds = array<i64: 1, 4, 1, 24>}, {transform_indices = @transform_3, window_bounds = array<i64: 1, 4, 8, 32>}, {transform_indices = @transform_4, window_bounds = array<i64: 1, 1, 32>}, {transform_indices = @transform_5, window_bounds = array<i64: 1, 1, 32>}, {transform_indices = @transform_6, window_bounds = array<i64: 1, 1, 32>}, {transform_indices = @transform_7, window_bounds = array<i64: 1, 32, 64>}, {transform_indices = @transform_8, window_bounds = array<i64: 1, 1, 64>}, {transform_indices = @transform_9, window_bounds = array<i64: 1, 64, 32>}, {transform_indices = @transform_10, window_bounds = array<i64: 1, 1, 32>}, {transform_indices = @transform_11, window_bounds = array<i64: 1, 1, 32>}, {transform_indices = @transform_12, window_bounds = array<i64: 1, 1, 32>}, {transform_indices = @transform_13, window_bounds = array<i64: 2, 8, 32>}]} {
    %c0_i32 = arith.constant 0 : i32
    %0 = arith.cmpi eq, %arg1, %c0_i32 : i32
    %1 = arith.extui %0 : i1 to i32
    %c0_i32_0 = arith.constant 0 : i32
    %2 = arith.cmpi ne, %1, %c0_i32_0 : i32
    scf.if %2 {
      %c0_92 = arith.constant 0 : index
      %c0_93 = arith.constant 0 : index
      %c0_94 = arith.constant 0 : index
      %223 = vector.load %arg2[%c0_92, %c0_93, %c0_94] : memref<2x8x32xf32, #tpu.memory_space<vmem>>, vector<2x8x32xf32>
      %c0_95 = arith.constant 0 : index
      %c0_96 = arith.constant 0 : index
      %c0_97 = arith.constant 0 : index
      %224 = vector.load %arg16[%c0_95, %c0_96, %c0_97] : memref<2x8x32xf32, #tpu.memory_space<vmem>>, vector<2x8x32xf32>
      tpu.vector_store %arg16[%c0_95, %c0_96, %c0_97], %223 {strides = array<i32>} : memref<2x8x32xf32, #tpu.memory_space<vmem>>, vector<2x8x32xf32>,
    } else {
    }
    %3 = tpu.iota {dimensions = array<i32: 0>} : vector<8x8xi32>
    %4 = tpu.iota {dimensions = array<i32: 1>} : vector<8x8xi32>
    %5 = arith.cmpi sle, %4, %3 : vector<8x8xi32>
    %c0 = arith.constant 0 : index
    %c0_1 = arith.constant 0 : index
    %c0_2 = arith.constant 0 : index
    %c0_3 = arith.constant 0 : index
    %6 = vector.load %arg3[%c0, %c0_1, %c0_2, %c0_3] : memref<1x4x32x24xbf16, #tpu.memory_space<vmem>>, vector<1x4x32x24xbf16>
    %7 = vector.shape_cast %6 : vector<1x4x32x24xbf16> to vector<4x32x24xbf16>
    %c0_4 = arith.constant 0 : index
    %c0_5 = arith.constant 0 : index
    %c0_6 = arith.constant 0 : index
    %c0_7 = arith.constant 0 : index
    %8 = vector.load %arg4[%c0_4, %c0_5, %c0_6, %c0_7] : memref<1x4x1x24xf32, #tpu.memory_space<vmem>>, vector<1x4x1x24xf32>
    %9 = vector.shape_cast %8 : vector<1x4x1x24xf32> to vector<4x1x24xf32>
    %c0_8 = arith.constant 0 : index
    %c0_9 = arith.constant 0 : index
    %c0_10 = arith.constant 0 : index
    %c0_11 = arith.constant 0 : index
    %10 = vector.load %arg5[%c0_8, %c0_9, %c0_10, %c0_11] : memref<1x4x8x32xbf16, #tpu.memory_space<vmem>>, vector<1x4x8x32xbf16>
    %11 = vector.shape_cast %10 : vector<1x4x8x32xbf16> to vector<4x8x32xbf16>
    %c0_12 = arith.constant 0 : index
    %c0_13 = arith.constant 0 : index
    %c0_14 = arith.constant 0 : index
    %12 = vector.load %arg6[%c0_12, %c0_13, %c0_14] : memref<1x1x32xf32, #tpu.memory_space<vmem>>, vector<1x1x32xf32>
    %13 = vector.shape_cast %12 : vector<1x1x32xf32> to vector<1x32xf32>
    %c0_15 = arith.constant 0 : index
    %c0_16 = arith.constant 0 : index
    %c0_17 = arith.constant 0 : index
    %14 = vector.load %arg7[%c0_15, %c0_16, %c0_17] : memref<1x1x32xf32, #tpu.memory_space<vmem>>, vector<1x1x32xf32>
    %15 = vector.shape_cast %14 : vector<1x1x32xf32> to vector<1x32xf32>
    %c0_18 = arith.constant 0 : index
    %c0_19 = arith.constant 0 : index
    %c0_20 = arith.constant 0 : index
    %16 = vector.load %arg8[%c0_18, %c0_19, %c0_20] : memref<1x1x32xf32, #tpu.memory_space<vmem>>, vector<1x1x32xf32>
    %17 = vector.shape_cast %16 : vector<1x1x32xf32> to vector<1x32xf32>
    %c0_21 = arith.constant 0 : index
    %c0_22 = arith.constant 0 : index
    %c0_23 = arith.constant 0 : index
    %18 = vector.load %arg9[%c0_21, %c0_22, %c0_23] : memref<1x32x64xbf16, #tpu.memory_space<vmem>>, vector<1x32x64xbf16>
    %19 = vector.shape_cast %18 : vector<1x32x64xbf16> to vector<32x64xbf16>
    %c0_24 = arith.constant 0 : index
    %c0_25 = arith.constant 0 : index
    %c0_26 = arith.constant 0 : index
    %20 = vector.load %arg10[%c0_24, %c0_25, %c0_26] : memref<1x1x64xf32, #tpu.memory_space<vmem>>, vector<1x1x64xf32>
    %21 = vector.shape_cast %20 : vector<1x1x64xf32> to vector<1x64xf32>
    %c0_27 = arith.constant 0 : index
    %c0_28 = arith.constant 0 : index
    %c0_29 = arith.constant 0 : index
    %22 = vector.load %arg11[%c0_27, %c0_28, %c0_29] : memref<1x64x32xbf16, #tpu.memory_space<vmem>>, vector<1x64x32xbf16>
    %23 = vector.shape_cast %22 : vector<1x64x32xbf16> to vector<64x32xbf16>
    %c0_30 = arith.constant 0 : index
    %c0_31 = arith.constant 0 : index
    %c0_32 = arith.constant 0 : index
    %24 = vector.load %arg12[%c0_30, %c0_31, %c0_32] : memref<1x1x32xf32, #tpu.memory_space<vmem>>, vector<1x1x32xf32>
    %25 = vector.shape_cast %24 : vector<1x1x32xf32> to vector<1x32xf32>
    %c0_33 = arith.constant 0 : index
    %c0_34 = arith.constant 0 : index
    %c0_35 = arith.constant 0 : index
    %26 = vector.load %arg13[%c0_33, %c0_34, %c0_35] : memref<1x1x32xf32, #tpu.memory_space<vmem>>, vector<1x1x32xf32>
    %27 = vector.shape_cast %26 : vector<1x1x32xf32> to vector<1x32xf32>
    %c0_36 = arith.constant 0 : index
    %c0_37 = arith.constant 0 : index
    %c0_38 = arith.constant 0 : index
    %28 = vector.load %arg14[%c0_36, %c0_37, %c0_38] : memref<1x1x32xf32, #tpu.memory_space<vmem>>, vector<1x1x32xf32>
    %29 = vector.shape_cast %28 : vector<1x1x32xf32> to vector<1x32xf32>
    %c0_39 = arith.constant 0 : index
    %c0_40 = arith.constant 0 : index
    %c0_41 = arith.constant 0 : index
    %30 = vector.load %arg16[%c0_39, %c0_40, %c0_41] : memref<2x8x32xf32, #tpu.memory_space<vmem>>, vector<1x8x32xf32>
    %31 = vector.shape_cast %30 : vector<1x8x32xf32> to vector<8x32xf32>
    %32 = arith.truncf %31 : vector<8x32xf32> to vector<8x32xbf16>
    %33 = vector.shape_cast %32 : vector<8x32xbf16> to vector<1x8x32xbf16>
    %34 = vector.broadcast %33 : vector<1x8x32xbf16> to vector<4x8x32xbf16>
    "tpu.trace_start"() <{level = 10 : i32, message = "hsd,hdk->hsk"}> : () -> ()
    %cst = arith.constant dense<0.000000e+00> : vector<4x8x24xf32>
    %35 = tpu.matmul %34, %7, %cst {dimension_numbers = #tpu.dot_dimension_numbers<[2], [1], [1], [2], [0, 0, 0, 1, 1, 2], [0], [0]>} : vector<4x8x32xbf16>, vector<4x32x24xbf16>, vector<4x8x24xf32> -> vector<4x8x24xf32>
    "tpu.trace_stop"() : () -> ()
    %36 = vector.broadcast %9 : vector<4x1x24xf32> to vector<4x8x24xf32>
    %37 = arith.addf %35, %36 : vector<4x8x24xf32>
    %38 = vector.extract_strided_slice %37 {offsets = [0, 0, 0], sizes = [4, 8, 8], strides = [1, 1, 1]} : vector<4x8x24xf32> to vector<4x8x8xf32>
    %39 = vector.extract_strided_slice %37 {offsets = [0, 0, 8], sizes = [4, 8, 8], strides = [1, 1, 1]} : vector<4x8x24xf32> to vector<4x8x8xf32>
    %40 = vector.extract_strided_slice %37 {offsets = [0, 0, 16], sizes = [4, 8, 8], strides = [1, 1, 1]} : vector<4x8x24xf32> to vector<4x8x8xf32>
    %41 = arith.truncf %38 : vector<4x8x8xf32> to vector<4x8x8xbf16>
    %42 = arith.truncf %39 : vector<4x8x8xf32> to vector<4x8x8xbf16>
    "tpu.trace_start"() <{level = 10 : i32, message = "hsd,htd->hst"}> : () -> ()
    %cst_42 = arith.constant dense<0.000000e+00> : vector<4x8x8xf32>
    %43 = tpu.matmul %41, %42, %cst_42 {dimension_numbers = #tpu.dot_dimension_numbers<[2], [2], [1], [1], [0, 0, 0, 1, 1, 1], [0], [0]>} : vector<4x8x8xbf16>, vector<4x8x8xbf16>, vector<4x8x8xf32> -> vector<4x8x8xf32>
    %cst_43 = arith.constant -1.000000e+30 : f32
    "tpu.trace_stop"() : () -> ()
    %44 = vector.shape_cast %5 : vector<8x8xi1> to vector<1x8x8xi1>
    %45 = vector.broadcast %44 : vector<1x8x8xi1> to vector<4x8x8xi1>
    %46 = vector.broadcast %cst_43 : f32 to vector<4x8x8xf32>
    %47 = arith.select %45, %43, %46 : vector<4x8x8xi1>, vector<4x8x8xf32>
    %cst_44 = arith.constant dense<0xFF800000> : vector<4x8xf32>
    %48 = vector.multi_reduction <maximumf>, %47, %cst_44 [2] : vector<4x8x8xf32> to vector<4x8xf32>
    %49 = vector.shape_cast %48 : vector<4x8xf32> to vector<4x8x1xf32>
    %50 = vector.broadcast %49 : vector<4x8x1xf32> to vector<4x8x8xf32>
    %51 = arith.subf %47, %50 : vector<4x8x8xf32>
    %52 = math.exp %51 : vector<4x8x8xf32>
    %cst_45 = arith.constant dense<0.000000e+00> : vector<4x8xf32>
    %53 = vector.multi_reduction <add>, %52, %cst_45 [2] : vector<4x8x8xf32> to vector<4x8xf32>
    %54 = vector.shape_cast %53 : vector<4x8xf32> to vector<4x8x1xf32>
    %55 = tpu.reciprocal %54 {approx = true} : vector<4x8x1xf32> -> vector<4x8x1xf32>
    %56 = vector.broadcast %55 : vector<4x8x1xf32> to vector<4x8x8xf32>
    %57 = arith.mulf %52, %56 : vector<4x8x8xf32>
    %58 = arith.truncf %57 : vector<4x8x8xf32> to vector<4x8x8xbf16>
    %59 = arith.truncf %40 : vector<4x8x8xf32> to vector<4x8x8xbf16>
    "tpu.trace_start"() <{level = 10 : i32, message = "hst,htd->hsd"}> : () -> ()
    %cst_46 = arith.constant dense<0.000000e+00> : vector<4x8x8xf32>
    %60 = tpu.matmul %58, %59, %cst_46 {dimension_numbers = #tpu.dot_dimension_numbers<[2], [1], [1], [2], [0, 0, 0, 1, 1, 2], [0], [0]>} : vector<4x8x8xbf16>, vector<4x8x8xbf16>, vector<4x8x8xf32> -> vector<4x8x8xf32>
    "tpu.trace_stop"() : () -> ()
    %61 = arith.truncf %60 : vector<4x8x8xf32> to vector<4x8x8xbf16>
    "tpu.trace_start"() <{level = 10 : i32, message = "hsd,hdk->hsk"}> : () -> ()
    %cst_47 = arith.constant dense<0.000000e+00> : vector<4x8x32xf32>
    %62 = tpu.matmul %61, %11, %cst_47 {dimension_numbers = #tpu.dot_dimension_numbers<[2], [1], [1], [2], [0, 0, 0, 1, 1, 2], [0], [0]>} : vector<4x8x8xbf16>, vector<4x8x32xbf16>, vector<4x8x32xf32> -> vector<4x8x32xf32>
    "tpu.trace_stop"() : () -> ()
    %cst_48 = arith.constant dense<0.000000e+00> : vector<8x32xf32>
    %63 = vector.multi_reduction <add>, %62, %cst_48 [0] : vector<4x8x32xf32> to vector<8x32xf32>
    %64 = vector.broadcast %13 : vector<1x32xf32> to vector<8x32xf32>
    %65 = arith.addf %63, %64 : vector<8x32xf32>
    %66 = arith.addf %31, %65 : vector<8x32xf32>
    %cst_49 = arith.constant dense<0.000000e+00> : vector<8xf32>
    %67 = vector.multi_reduction <add>, %66, %cst_49 [1] : vector<8x32xf32> to vector<8xf32>
    %68 = vector.shape_cast %67 : vector<8xf32> to vector<8x1xf32>
    %cst_50 = arith.constant 3.200000e+01 : f32
    %69 = vector.broadcast %cst_50 : f32 to vector<8x1xf32>
    %70 = arith.divf %68, %69 : vector<8x1xf32>
    %71 = vector.broadcast %70 : vector<8x1xf32> to vector<8x32xf32>
    %72 = arith.subf %66, %71 : vector<8x32xf32>
    %73 = arith.mulf %72, %72 : vector<8x32xf32>
    %cst_51 = arith.constant dense<0.000000e+00> : vector<8xf32>
    %74 = vector.multi_reduction <add>, %73, %cst_51 [1] : vector<8x32xf32> to vector<8xf32>
    %75 = vector.shape_cast %74 : vector<8xf32> to vector<8x1xf32>
    %cst_52 = arith.constant 3.200000e+01 : f32
    %76 = vector.broadcast %cst_52 : f32 to vector<8x1xf32>
    %77 = arith.divf %75, %76 : vector<8x1xf32>
    %78 = vector.broadcast %70 : vector<8x1xf32> to vector<8x32xf32>
    %79 = arith.subf %66, %78 : vector<8x32xf32>
    %cst_53 = arith.constant 9.99999974E-6 : f32
    %80 = vector.broadcast %cst_53 : f32 to vector<8x1xf32>
    %81 = arith.addf %77, %80 : vector<8x1xf32>
    %82 = math.rsqrt %81 : vector<8x1xf32>
    %83 = vector.broadcast %82 : vector<8x1xf32> to vector<8x32xf32>
    %84 = arith.mulf %79, %83 : vector<8x32xf32>
    %85 = vector.broadcast %15 : vector<1x32xf32> to vector<8x32xf32>
    %86 = arith.mulf %84, %85 : vector<8x32xf32>
    %87 = vector.broadcast %17 : vector<1x32xf32> to vector<8x32xf32>
    %88 = arith.addf %86, %87 : vector<8x32xf32>
    %89 = arith.truncf %88 : vector<8x32xf32> to vector<8x32xbf16>
    %cst_54 = arith.constant dense<0.000000e+00> : vector<8x64xf32>
    %90 = tpu.matmul %89, %19, %cst_54 {dimension_numbers = #tpu.dot_dimension_numbers<[1], [0], [0], [1], [0, 0, 1, 1], [], []>} : vector<8x32xbf16>, vector<32x64xbf16>, vector<8x64xf32> -> vector<8x64xf32>
    %91 = vector.broadcast %21 : vector<1x64xf32> to vector<8x64xf32>
    %92 = arith.addf %90, %91 : vector<8x64xf32>
    %cst_55 = arith.constant 0.000000e+00 : f32
    %93 = vector.broadcast %cst_55 : f32 to vector<8x64xf32>
    %94 = arith.maximumf %92, %93 : vector<8x64xf32>
    %95 = arith.truncf %94 : vector<8x64xf32> to vector<8x64xbf16>
    %cst_56 = arith.constant dense<0.000000e+00> : vector<8x32xf32>
    %96 = tpu.matmul %95, %23, %cst_56 {dimension_numbers = #tpu.dot_dimension_numbers<[1], [0], [0], [1], [0, 0, 1, 1], [], []>} : vector<8x64xbf16>, vector<64x32xbf16>, vector<8x32xf32> -> vector<8x32xf32>
    %97 = vector.broadcast %25 : vector<1x32xf32> to vector<8x32xf32>
    %98 = arith.addf %96, %97 : vector<8x32xf32>
    %99 = arith.addf %88, %98 : vector<8x32xf32>
    %cst_57 = arith.constant dense<0.000000e+00> : vector<8xf32>
    %100 = vector.multi_reduction <add>, %99, %cst_57 [1] : vector<8x32xf32> to vector<8xf32>
    %101 = vector.shape_cast %100 : vector<8xf32> to vector<8x1xf32>
    %cst_58 = arith.constant 3.200000e+01 : f32
    %102 = vector.broadcast %cst_58 : f32 to vector<8x1xf32>
    %103 = arith.divf %101, %102 : vector<8x1xf32>
    %104 = vector.broadcast %103 : vector<8x1xf32> to vector<8x32xf32>
    %105 = arith.subf %99, %104 : vector<8x32xf32>
    %106 = arith.mulf %105, %105 : vector<8x32xf32>
    %cst_59 = arith.constant dense<0.000000e+00> : vector<8xf32>
    %107 = vector.multi_reduction <add>, %106, %cst_59 [1] : vector<8x32xf32> to vector<8xf32>
    %108 = vector.shape_cast %107 : vector<8xf32> to vector<8x1xf32>
    %cst_60 = arith.constant 3.200000e+01 : f32
    %109 = vector.broadcast %cst_60 : f32 to vector<8x1xf32>
    %110 = arith.divf %108, %109 : vector<8x1xf32>
    %111 = vector.broadcast %103 : vector<8x1xf32> to vector<8x32xf32>
    %112 = arith.subf %99, %111 : vector<8x32xf32>
    %cst_61 = arith.constant 9.99999974E-6 : f32
    %113 = vector.broadcast %cst_61 : f32 to vector<8x1xf32>
    %114 = arith.addf %110, %113 : vector<8x1xf32>
    %115 = math.rsqrt %114 : vector<8x1xf32>
    %116 = vector.broadcast %115 : vector<8x1xf32> to vector<8x32xf32>
    %117 = arith.mulf %112, %116 : vector<8x32xf32>
    %118 = vector.broadcast %27 : vector<1x32xf32> to vector<8x32xf32>
    %119 = arith.mulf %117, %118 : vector<8x32xf32>
    %120 = vector.broadcast %29 : vector<1x32xf32> to vector<8x32xf32>
    %121 = arith.addf %119, %120 : vector<8x32xf32>
    %c0_62 = arith.constant 0 : index
    %c0_63 = arith.constant 0 : index
    %c0_64 = arith.constant 0 : index
    %122 = vector.load %arg16[%c0_62, %c0_63, %c0_64] : memref<2x8x32xf32, #tpu.memory_space<vmem>>, vector<1x8x32xf32>
    %123 = vector.shape_cast %122 : vector<1x8x32xf32> to vector<8x32xf32>
    %124 = vector.shape_cast %121 : vector<8x32xf32> to vector<1x8x32xf32>
    tpu.vector_store %arg16[%c0_62, %c0_63, %c0_64], %124 {strides = array<i32>} : memref<2x8x32xf32, #tpu.memory_space<vmem>>, vector<1x8x32xf32>,
    %c1 = arith.constant 1 : index
    %c0_65 = arith.constant 0 : index
    %c0_66 = arith.constant 0 : index
    %125 = vector.load %arg16[%c1, %c0_65, %c0_66] : memref<2x8x32xf32, #tpu.memory_space<vmem>>, vector<1x8x32xf32>
    %126 = vector.shape_cast %125 : vector<1x8x32xf32> to vector<8x32xf32>
    %127 = arith.truncf %126 : vector<8x32xf32> to vector<8x32xbf16>
    %128 = vector.shape_cast %127 : vector<8x32xbf16> to vector<1x8x32xbf16>
    %129 = vector.broadcast %128 : vector<1x8x32xbf16> to vector<4x8x32xbf16>
    "tpu.trace_start"() <{level = 10 : i32, message = "hsd,hdk->hsk"}> : () -> ()
    %cst_67 = arith.constant dense<0.000000e+00> : vector<4x8x24xf32>
    %130 = tpu.matmul %129, %7, %cst_67 {dimension_numbers = #tpu.dot_dimension_numbers<[2], [1], [1], [2], [0, 0, 0, 1, 1, 2], [0], [0]>} : vector<4x8x32xbf16>, vector<4x32x24xbf16>, vector<4x8x24xf32> -> vector<4x8x24xf32>
    "tpu.trace_stop"() : () -> ()
    %131 = vector.broadcast %9 : vector<4x1x24xf32> to vector<4x8x24xf32>
    %132 = arith.addf %130, %131 : vector<4x8x24xf32>
    %133 = vector.extract_strided_slice %132 {offsets = [0, 0, 0], sizes = [4, 8, 8], strides = [1, 1, 1]} : vector<4x8x24xf32> to vector<4x8x8xf32>
    %134 = vector.extract_strided_slice %132 {offsets = [0, 0, 8], sizes = [4, 8, 8], strides = [1, 1, 1]} : vector<4x8x24xf32> to vector<4x8x8xf32>
    %135 = vector.extract_strided_slice %132 {offsets = [0, 0, 16], sizes = [4, 8, 8], strides = [1, 1, 1]} : vector<4x8x24xf32> to vector<4x8x8xf32>
    %136 = arith.truncf %133 : vector<4x8x8xf32> to vector<4x8x8xbf16>
    %137 = arith.truncf %134 : vector<4x8x8xf32> to vector<4x8x8xbf16>
    "tpu.trace_start"() <{level = 10 : i32, message = "hsd,htd->hst"}> : () -> ()
    %cst_68 = arith.constant dense<0.000000e+00> : vector<4x8x8xf32>
    %138 = tpu.matmul %136, %137, %cst_68 {dimension_numbers = #tpu.dot_dimension_numbers<[2], [2], [1], [1], [0, 0, 0, 1, 1, 1], [0], [0]>} : vector<4x8x8xbf16>, vector<4x8x8xbf16>, vector<4x8x8xf32> -> vector<4x8x8xf32>
    %cst_69 = arith.constant -1.000000e+30 : f32
    "tpu.trace_stop"() : () -> ()
    %139 = vector.shape_cast %5 : vector<8x8xi1> to vector<1x8x8xi1>
    %140 = vector.broadcast %139 : vector<1x8x8xi1> to vector<4x8x8xi1>
    %141 = vector.broadcast %cst_69 : f32 to vector<4x8x8xf32>
    %142 = arith.select %140, %138, %141 : vector<4x8x8xi1>, vector<4x8x8xf32>
    %cst_70 = arith.constant dense<0xFF800000> : vector<4x8xf32>
    %143 = vector.multi_reduction <maximumf>, %142, %cst_70 [2] : vector<4x8x8xf32> to vector<4x8xf32>
    %144 = vector.shape_cast %143 : vector<4x8xf32> to vector<4x8x1xf32>
    %145 = vector.broadcast %144 : vector<4x8x1xf32> to vector<4x8x8xf32>
    %146 = arith.subf %142, %145 : vector<4x8x8xf32>
    %147 = math.exp %146 : vector<4x8x8xf32>
    %cst_71 = arith.constant dense<0.000000e+00> : vector<4x8xf32>
    %148 = vector.multi_reduction <add>, %147, %cst_71 [2] : vector<4x8x8xf32> to vector<4x8xf32>
    %149 = vector.shape_cast %148 : vector<4x8xf32> to vector<4x8x1xf32>
    %150 = tpu.reciprocal %149 {approx = true} : vector<4x8x1xf32> -> vector<4x8x1xf32>
    %151 = vector.broadcast %150 : vector<4x8x1xf32> to vector<4x8x8xf32>
    %152 = arith.mulf %147, %151 : vector<4x8x8xf32>
    %153 = arith.truncf %152 : vector<4x8x8xf32> to vector<4x8x8xbf16>
    %154 = arith.truncf %135 : vector<4x8x8xf32> to vector<4x8x8xbf16>
    "tpu.trace_start"() <{level = 10 : i32, message = "hst,htd->hsd"}> : () -> ()
    %cst_72 = arith.constant dense<0.000000e+00> : vector<4x8x8xf32>
    %155 = tpu.matmul %153, %154, %cst_72 {dimension_numbers = #tpu.dot_dimension_numbers<[2], [1], [1], [2], [0, 0, 0, 1, 1, 2], [0], [0]>} : vector<4x8x8xbf16>, vector<4x8x8xbf16>, vector<4x8x8xf32> -> vector<4x8x8xf32>
    "tpu.trace_stop"() : () -> ()
    %156 = arith.truncf %155 : vector<4x8x8xf32> to vector<4x8x8xbf16>
    "tpu.trace_start"() <{level = 10 : i32, message = "hsd,hdk->hsk"}> : () -> ()
    %cst_73 = arith.constant dense<0.000000e+00> : vector<4x8x32xf32>
    %157 = tpu.matmul %156, %11, %cst_73 {dimension_numbers = #tpu.dot_dimension_numbers<[2], [1], [1], [2], [0, 0, 0, 1, 1, 2], [0], [0]>} : vector<4x8x8xbf16>, vector<4x8x32xbf16>, vector<4x8x32xf32> -> vector<4x8x32xf32>
    "tpu.trace_stop"() : () -> ()
    %cst_74 = arith.constant dense<0.000000e+00> : vector<8x32xf32>
    %158 = vector.multi_reduction <add>, %157, %cst_74 [0] : vector<4x8x32xf32> to vector<8x32xf32>
    %159 = vector.broadcast %13 : vector<1x32xf32> to vector<8x32xf32>
    %160 = arith.addf %158, %159 : vector<8x32xf32>
    %161 = arith.addf %126, %160 : vector<8x32xf32>
    %cst_75 = arith.constant dense<0.000000e+00> : vector<8xf32>
    %162 = vector.multi_reduction <add>, %161, %cst_75 [1] : vector<8x32xf32> to vector<8xf32>
    %163 = vector.shape_cast %162 : vector<8xf32> to vector<8x1xf32>
    %cst_76 = arith.constant 3.200000e+01 : f32
    %164 = vector.broadcast %cst_76 : f32 to vector<8x1xf32>
    %165 = arith.divf %163, %164 : vector<8x1xf32>
    %166 = vector.broadcast %165 : vector<8x1xf32> to vector<8x32xf32>
    %167 = arith.subf %161, %166 : vector<8x32xf32>
    %168 = arith.mulf %167, %167 : vector<8x32xf32>
    %cst_77 = arith.constant dense<0.000000e+00> : vector<8xf32>
    %169 = vector.multi_reduction <add>, %168, %cst_77 [1] : vector<8x32xf32> to vector<8xf32>
    %170 = vector.shape_cast %169 : vector<8xf32> to vector<8x1xf32>
    %cst_78 = arith.constant 3.200000e+01 : f32
    %171 = vector.broadcast %cst_78 : f32 to vector<8x1xf32>
    %172 = arith.divf %170, %171 : vector<8x1xf32>
    %173 = vector.broadcast %165 : vector<8x1xf32> to vector<8x32xf32>
    %174 = arith.subf %161, %173 : vector<8x32xf32>
    %cst_79 = arith.constant 9.99999974E-6 : f32
    %175 = vector.broadcast %cst_79 : f32 to vector<8x1xf32>
    %176 = arith.addf %172, %175 : vector<8x1xf32>
    %177 = math.rsqrt %176 : vector<8x1xf32>
    %178 = vector.broadcast %177 : vector<8x1xf32> to vector<8x32xf32>
    %179 = arith.mulf %174, %178 : vector<8x32xf32>
    %180 = vector.broadcast %15 : vector<1x32xf32> to vector<8x32xf32>
    %181 = arith.mulf %179, %180 : vector<8x32xf32>
    %182 = vector.broadcast %17 : vector<1x32xf32> to vector<8x32xf32>
    %183 = arith.addf %181, %182 : vector<8x32xf32>
    %184 = arith.truncf %183 : vector<8x32xf32> to vector<8x32xbf16>
    %cst_80 = arith.constant dense<0.000000e+00> : vector<8x64xf32>
    %185 = tpu.matmul %184, %19, %cst_80 {dimension_numbers = #tpu.dot_dimension_numbers<[1], [0], [0], [1], [0, 0, 1, 1], [], []>} : vector<8x32xbf16>, vector<32x64xbf16>, vector<8x64xf32> -> vector<8x64xf32>
    %186 = vector.broadcast %21 : vector<1x64xf32> to vector<8x64xf32>
    %187 = arith.addf %185, %186 : vector<8x64xf32>
    %cst_81 = arith.constant 0.000000e+00 : f32
    %188 = vector.broadcast %cst_81 : f32 to vector<8x64xf32>
    %189 = arith.maximumf %187, %188 : vector<8x64xf32>
    %190 = arith.truncf %189 : vector<8x64xf32> to vector<8x64xbf16>
    %cst_82 = arith.constant dense<0.000000e+00> : vector<8x32xf32>
    %191 = tpu.matmul %190, %23, %cst_82 {dimension_numbers = #tpu.dot_dimension_numbers<[1], [0], [0], [1], [0, 0, 1, 1], [], []>} : vector<8x64xbf16>, vector<64x32xbf16>, vector<8x32xf32> -> vector<8x32xf32>
    %192 = vector.broadcast %25 : vector<1x32xf32> to vector<8x32xf32>
    %193 = arith.addf %191, %192 : vector<8x32xf32>
    %194 = arith.addf %183, %193 : vector<8x32xf32>
    %cst_83 = arith.constant dense<0.000000e+00> : vector<8xf32>
    %195 = vector.multi_reduction <add>, %194, %cst_83 [1] : vector<8x32xf32> to vector<8xf32>
    %196 = vector.shape_cast %195 : vector<8xf32> to vector<8x1xf32>
    %cst_84 = arith.constant 3.200000e+01 : f32
    %197 = vector.broadcast %cst_84 : f32 to vector<8x1xf32>
    %198 = arith.divf %196, %197 : vector<8x1xf32>
    %199 = vector.broadcast %198 : vector<8x1xf32> to vector<8x32xf32>
    %200 = arith.subf %194, %199 : vector<8x32xf32>
    %201 = arith.mulf %200, %200 : vector<8x32xf32>
    %cst_85 = arith.constant dense<0.000000e+00> : vector<8xf32>
    %202 = vector.multi_reduction <add>, %201, %cst_85 [1] : vector<8x32xf32> to vector<8xf32>
    %203 = vector.shape_cast %202 : vector<8xf32> to vector<8x1xf32>
    %cst_86 = arith.constant 3.200000e+01 : f32
    %204 = vector.broadcast %cst_86 : f32 to vector<8x1xf32>
    %205 = arith.divf %203, %204 : vector<8x1xf32>
    %206 = vector.broadcast %198 : vector<8x1xf32> to vector<8x32xf32>
    %207 = arith.subf %194, %206 : vector<8x32xf32>
    %cst_87 = arith.constant 9.99999974E-6 : f32
    %208 = vector.broadcast %cst_87 : f32 to vector<8x1xf32>
    %209 = arith.addf %205, %208 : vector<8x1xf32>
    %210 = math.rsqrt %209 : vector<8x1xf32>
    %211 = vector.broadcast %210 : vector<8x1xf32> to vector<8x32xf32>
    %212 = arith.mulf %207, %211 : vector<8x32xf32>
    %213 = vector.broadcast %27 : vector<1x32xf32> to vector<8x32xf32>
    %214 = arith.mulf %212, %213 : vector<8x32xf32>
    %215 = vector.broadcast %29 : vector<1x32xf32> to vector<8x32xf32>
    %216 = arith.addf %214, %215 : vector<8x32xf32>
    %c1_88 = arith.constant 1 : index
    %c0_89 = arith.constant 0 : index
    %c0_90 = arith.constant 0 : index
    %217 = vector.load %arg16[%c1_88, %c0_89, %c0_90] : memref<2x8x32xf32, #tpu.memory_space<vmem>>, vector<1x8x32xf32>
    %218 = vector.shape_cast %217 : vector<1x8x32xf32> to vector<8x32xf32>
    %219 = vector.shape_cast %216 : vector<8x32xf32> to vector<1x8x32xf32>
    tpu.vector_store %arg16[%c1_88, %c0_89, %c0_90], %219 {strides = array<i32>} : memref<2x8x32xf32, #tpu.memory_space<vmem>>, vector<1x8x32xf32>,
    %c1_i32 = arith.constant 1 : i32
    %220 = arith.cmpi eq, %arg1, %c1_i32 : i32
    %221 = arith.extui %220 : i1 to i32
    %c0_i32_91 = arith.constant 0 : i32
    %222 = arith.cmpi ne, %221, %c0_i32_91 : i32
    scf.if %222 {
      %c0_92 = arith.constant 0 : index
      %c0_93 = arith.constant 0 : index
      %c0_94 = arith.constant 0 : index
      %223 = vector.load %arg16[%c0_92, %c0_93, %c0_94] : memref<2x8x32xf32, #tpu.memory_space<vmem>>, vector<2x8x32xf32>
      %c0_95 = arith.constant 0 : index
      %c0_96 = arith.constant 0 : index
      %c0_97 = arith.constant 0 : index
      %224 = vector.load %arg15[%c0_95, %c0_96, %c0_97] : memref<2x8x32xf32, #tpu.memory_space<vmem>>, vector<2x8x32xf32>
      tpu.vector_store %arg15[%c0_95, %c0_96, %c0_97], %223 {strides = array<i32>} : memref<2x8x32xf32, #tpu.memory_space<vmem>>, vector<2x8x32xf32>,
    } else {
    }
    return
  }
  func.func @transform_0(%arg0: i32, %arg1: i32) -> (i32, i32, i32) {
    %c0_i32 = arith.constant 0 : i32
    %c0_i32_0 = arith.constant 0 : i32
    %c0_i32_1 = arith.constant 0 : i32
    return %arg0, %c0_i32, %c0_i32_0 : i32, i32, i32
  }
  func.func @transform_1(%arg0: i32, %arg1: i32) -> (i32, i32, i32, i32) {
    %c0_i32 = arith.constant 0 : i32
    %c0_i32_0 = arith.constant 0 : i32
    %c0_i32_1 = arith.constant 0 : i32
    %c0_i32_2 = arith.constant 0 : i32
    return %arg1, %c0_i32, %c0_i32_0, %c0_i32_1 : i32, i32, i32, i32
  }
  func.func @transform_2(%arg0: i32, %arg1: i32) -> (i32, i32, i32, i32) {
    %c0_i32 = arith.constant 0 : i32
    %c0_i32_0 = arith.constant 0 : i32
    %c0_i32_1 = arith.constant 0 : i32
    %c0_i32_2 = arith.constant 0 : i32
    return %arg1, %c0_i32, %c0_i32_0, %c0_i32_1 : i32, i32, i32, i32
  }
  func.func @transform_3(%arg0: i32, %arg1: i32) -> (i32, i32, i32, i32) {
    %c0_i32 = arith.constant 0 : i32
    %c0_i32_0 = arith.constant 0 : i32
    %c0_i32_1 = arith.constant 0 : i32
    %c0_i32_2 = arith.constant 0 : i32
    return %arg1, %c0_i32, %c0_i32_0, %c0_i32_1 : i32, i32, i32, i32
  }
  func.func @transform_4(%arg0: i32, %arg1: i32) -> (i32, i32, i32) {
    %c0_i32 = arith.constant 0 : i32
    %c0_i32_0 = arith.constant 0 : i32
    %c0_i32_1 = arith.constant 0 : i32
    return %arg1, %c0_i32, %c0_i32_0 : i32, i32, i32
  }
  func.func @transform_5(%arg0: i32, %arg1: i32) -> (i32, i32, i32) {
    %c0_i32 = arith.constant 0 : i32
    %c0_i32_0 = arith.constant 0 : i32
    %c0_i32_1 = arith.constant 0 : i32
    return %arg1, %c0_i32, %c0_i32_0 : i32, i32, i32
  }
  func.func @transform_6(%arg0: i32, %arg1: i32) -> (i32, i32, i32) {
    %c0_i32 = arith.constant 0 : i32
    %c0_i32_0 = arith.constant 0 : i32
    %c0_i32_1 = arith.constant 0 : i32
    return %arg1, %c0_i32, %c0_i32_0 : i32, i32, i32
  }
  func.func @transform_7(%arg0: i32, %arg1: i32) -> (i32, i32, i32) {
    %c0_i32 = arith.constant 0 : i32
    %c0_i32_0 = arith.constant 0 : i32
    %c0_i32_1 = arith.constant 0 : i32
    return %arg1, %c0_i32, %c0_i32_0 : i32, i32, i32
  }
  func.func @transform_8(%arg0: i32, %arg1: i32) -> (i32, i32, i32) {
    %c0_i32 = arith.constant 0 : i32
    %c0_i32_0 = arith.constant 0 : i32
    %c0_i32_1 = arith.constant 0 : i32
    return %arg1, %c0_i32, %c0_i32_0 : i32, i32, i32
  }
  func.func @transform_9(%arg0: i32, %arg1: i32) -> (i32, i32, i32) {
    %c0_i32 = arith.constant 0 : i32
    %c0_i32_0 = arith.constant 0 : i32
    %c0_i32_1 = arith.constant 0 : i32
    return %arg1, %c0_i32, %c0_i32_0 : i32, i32, i32
  }
  func.func @transform_10(%arg0: i32, %arg1: i32) -> (i32, i32, i32) {
    %c0_i32 = arith.constant 0 : i32
    %c0_i32_0 = arith.constant 0 : i32
    %c0_i32_1 = arith.constant 0 : i32
    return %arg1, %c0_i32, %c0_i32_0 : i32, i32, i32
  }
  func.func @transform_11(%arg0: i32, %arg1: i32) -> (i32, i32, i32) {
    %c0_i32 = arith.constant 0 : i32
    %c0_i32_0 = arith.constant 0 : i32
    %c0_i32_1 = arith.constant 0 : i32
    return %arg1, %c0_i32, %c0_i32_0 : i32, i32, i32
  }
  func.func @transform_12(%arg0: i32, %arg1: i32) -> (i32, i32, i32) {
    %c0_i32 = arith.constant 0 : i32
    %c0_i32_0 = arith.constant 0 : i32
    %c0_i32_1 = arith.constant 0 : i32
    return %arg1, %c0_i32, %c0_i32_0 : i32, i32, i32
  }
  func.func @transform_13(%arg0: i32, %arg1: i32) -> (i32, i32, i32) {
    %c0_i32 = arith.constant 0 : i32
    %c0_i32_0 = arith.constant 0 : i32
    %c0_i32_1 = arith.constant 0 : i32
    return %arg0, %c0_i32, %c0_i32_0 : i32, i32, i32
  }
}

</mosaic_0001>

<bundles_post_ra>
// kernel: tpu_custom_call.1
= control target key start
LH: loop header
LB: loop body
LE: loop exit
PB: predicated region body
PF: predicated region fallthrough
CT: control target
= control target key end

     0   :  { %s4119_s0 = inlined_call_operand.vmem [shape: f32[2,8,32], index: 0, kind: input, shape index: {}]   ;;  %s4120_s1 = inlined_call_operand.vmem [shape: bf16[2,4,32,24], index: 1, kind: input, shape index: {}]   ;;  %s4121_s2 = inlined_call_operand.vmem [shape: f32[2,4,1,24], index: 2, kind: input, shape index: {}]   ;;  %s4122_s3 = inlined_call_operand.vmem [shape: bf16[2,4,8,32], index: 3, kind: input, shape index: {}]   ;;  %s4123_s4 = inlined_call_operand.vmem [shape: f32[2,1,32], index: 4, kind: input, shape index: {}]   ;;  %s4124_s5 = inlined_call_operand.vmem [shape: f32[2,1,32], index: 5, kind: input, shape index: {}]   ;;  %s4125_s6 = inlined_call_operand.vmem [shape: f32[2,1,32], index: 6, kind: input, shape index: {}]   ;;  %s4126_s7 = inlined_call_operand.vmem [shape: bf16[2,32,64], index: 7, kind: input, shape index: {}]   ;;  %s4127_s8 = inlined_call_operand.vmem [shape: f32[2,1,64], index: 8, kind: input, shape index: {}]   ;;  %s4128_s9 = inlined_call_operand.vmem [shape: bf16[2,64,32], index: 9, kind: input, shape index: {}]   ;;  %s4129_s10 = inlined_call_operand.vmem [shape: f32[2,1,32], index: 10, kind: input, shape index: {}]   ;;  %s4130_s11 = inlined_call_operand.vmem [shape: f32[2,1,32], index: 11, kind: input, shape index: {}]   ;;  %s4131_s12 = inlined_call_operand.vmem [shape: f32[2,1,32], index: 12, kind: input, shape index: {}]   ;;  %s4132_s13 = inlined_call_operand.hbm [shape: f32[2,8,32], index: 13, kind: output, shape index: {}]  }
   0x1   :  { %4136 = sst [smem:[#allocation9_spill]] %s4119_s0 }
   0x2   :  { %4137 = sst [smem:[#allocation10_spill]] %s4120_s1 }
   0x3   :  { %4138 = sst [smem:[#allocation11_spill]] %s4121_s2 }
   0x4   :  { %4139 = sst [smem:[#allocation12_spill]] %s4122_s3 }
   0x5   :  { %4140 = sst [smem:[#allocation13_spill]] %s4132_s13 }
   0x6   :  { %18 = vsyncpa [#allocation4], 0  ;;  %s3537_s25 = smov 0   ;;  %s3539_s26 = smov 0  }
   0x7   :  { %s3541_s27 = smov 0  }
   0x8 LB: > { %4141 = sst [smem:[#allocation6_spill]] %s3454_s26  ;;  %s33_s29 = sadd.s32 1, %s3454_s26  ;;  %s3458_s27 = sphi %s3541_s27, %s24_s27   ;;  %s3454_s26 = sphi %s3539_s26, %s4159_s26   ;;  %s3450_s25 = sphi %s3537_s25, %s4158_s25  }
   0x9   : > { %4142 = sst [smem:[#allocation7_spill]] %s3458_s27  ;;  %p34_p0 = scmp.ge.s32.totalorder %s33_s29, 2 }
   0xa   : > { %p2900_p1 = scmp.ge.s32.totalorder %s3458_s27, 1  ;;  %p506_p2 = scmp.lt.s32.totalorder %s3458_s27, 3 }
   0xb   : > { %s4161_s29 = smov (%p34_p0, %s33_s29), 0 }
   0xc   : > { %4143 = sst [smem:[#allocation8_spill]] %s4161_s29  ;;  %p507_p3 = pnand %p2900_p1, %p506_p2 }
   0xd   : > { %p596_p4 = scmp.lt.s32.totalorder (!%p507_p3), %s3450_s25, 1  ;;  %s4144_s1 = sld [smem:[#allocation10_spill]] (!%p507_p3) }
   0xe   : > { %510 = sbr.rel (%p507_p3) target bundleno = 4077 (0xfed), region = 72  ;;  %s4145_s2 = sld [smem:[#allocation11_spill]] (!%p507_p3) }
   0xf   : > { %s4146_s3 = sld [smem:[#allocation12_spill]] (!%p507_p3)  ;;  %p2910_p5 = scmp.ne.s32.totalorder (!%p507_p3), %s3450_s25, 0 }
  0x13   : > { %s3560_s30 = scalar_select %p596_p4, %s3450_s25, 1 }
  0x15   : > { %s2977_s14 = sshll.u32 %s3560_s30, 6  ;;  %s2903_s15 = sshll.u32 %s3560_s30, 2 }
  0x16   : > { %s3567_s18 = scalar_lea.vmem %s4144_s1, %s2977_s14  ;;  %s3572_s21 = scalar_lea.vmem %s4145_s2, %s2903_s15 }
  0x17   : > { %s2978_s22 = sshll.u32 %s3560_s30, 4  ;;  %s626_s28 = scalar_lea.vmem %s4127_s8, %s3560_s30 }
  0x18   : > { %s3582_s13 = scalar_lea.vmem %s4146_s3, %s2978_s22  ;;  %s3595_s1 = scalar_lea.vmem %s4126_s7, %s2978_s22 }
  0x19   : > { %s2980_s26 = sshll.u32 %s3560_s30, 5  ;;  %s634_s16 = scalar_lea.vmem %s4129_s10, %s3560_s30 }
  0x1a   : > { %s3605_s3 = scalar_lea.vmem %s4128_s9, %s2980_s26  ;;  %s637_s15 = scalar_lea.vmem %s4130_s11, %s3560_s30 }
  0x1b   : > { %s640_s14 = scalar_lea.vmem %s4131_s12, %s3560_s30  ;;  %646 = sbr.rel (%p2910_p5) target bundleno = 36 (0x24), region = 76 }
  0x1c   : > { %s4147_s2 = sld [smem:[#allocation9_spill]] (!%p2910_p5) }
  0x20   : > { %vm649_vm0 = vcmask 261120  }
  0x22   : > { %v647_v0 = vld [vmem:[%s4147_s2] sm:$0xff]  ;;  %v648_v1 = vld [vmem:[%s4147_s2 + $0x8] sm:$0xff] }
  0x23   : > { %650 = vst.msk [vmem:[#allocation2] sm:$0xff] %vm649_vm0, %v647_v0  ;;  %651 = vst.msk [vmem:[#allocation2 + $0x8] sm:$0xff] %vm649_vm0, %v648_v1 }
  0x24 PF: > { %v3627_v2 = vld [vmem:[%s3567_s18 + $0x8] sm:$0xff]   ;;  %v3460_v3 = vmov 0.0   ;;  %v3631_v4 = vld [vmem:[%s3567_s18] sm:$0xff]   ;;  %vm3461_vm1 = vmmov 0   ;;  %vm738_vm2 = vcmask 261120   ;;  %v3654_v9 = vld [vmem:[%s3567_s18 + $0x18] sm:$0xff]   ;;  %v652_v49 = vlaneseq  ;;  %s4150_s0 = scalar_lea.vmem %s4123_s4, %s3560_s30  ;;  %s4151_s17 = scalar_lea.vmem %s4124_s5, %s3560_s30 }
  0x25   : > { %3069 = vmatprep.subr.bf16.mxu1 %v3460_v3  ;;  %3085 = vmatprep.subr.bf16.mxu0 %v3460_v3  ;;  %v3638_v5 = vld [vmem:[%s3567_s18 + $0x28] sm:$0xff]   ;;  %v3650_v8 = vld [vmem:[%s3567_s18 + $0x20] sm:$0xff]   ;;  %v3659_v10 = vld [vmem:[%s3567_s18 + $0x10] sm:$0xff]   ;;  %vm945_vm3 = vcmask 64512   ;;  %vm1198_vm5 = vcmask 1043456   ;;  %s4152_s23 = scalar_lea.vmem %s4125_s6, %s3560_s30  ;;  %vm1711_vm6 = vcmask 523264  }
  0x26   : > { %3070 = vmatpush3.bf16.msra.mxu1 %v3627_v2  ;;  %3073 = vmatprep.mubr.msk.bf16.mxu1 %vm3461_vm1, %v3460_v3  ;;  %v3672_v11 = vld [vmem:[%s3567_s18 + $0x38] sm:$0xff]   ;;  %v3678_v12 = vld [vmem:[%s3567_s18 + $0x30] sm:$0xff]   ;;  %v3689_v13 = vld [vmem:[%s3572_s21] ss:$0 sm:$0xff]  ;;  %s3462_s18 = smov 120   ;;  %v653_v50 = vshrl.u32 %v652_v49, 7 }
  0x27   : > { %3071 = vmatprep.subr.bf16.mxu1 %v3460_v3  ;;  %3089 = vmatprep.mubr.msk.bf16.mxu0 %vm3461_vm1, %v3460_v3  ;;  %v3692_v15 = vld [vmem:[%s3572_s21 + $0x2] ss:$0 sm:$0xff]  ;;  %v3703_v25 = vld [vmem:[%s3572_s21 + $0x1] ss:$0 sm:$0xff]  ;;  %v3713_v34 = vld [vmem:[%s3572_s21 + $0x3] ss:$0 sm:$0xff] }
  0x28   : > { %3086 = vmatpush3.bf16.msra.mxu0 %v3638_v5  ;;  %v655_v51 = vand.u32 127, %v652_v49  ;;  %s3463_s21 = smov 112   ;;  %p2972_p6 = scmp.ne.s32.totalorder %s3450_s25, 1 }
  0x29   : > { %3087 = vmatprep.subr.bf16.mxu0 %v3460_v3 }
  0x2a   : > { %v3641_v6 = vld [vmem:[#allocation2] sm:$0xff]  ;;  %3072 = vmatpush3.bf16.msra.mxu1 %v3631_v4  ;;  %vm3744_vm4 = vcmp.le.s32.totalorder %v655_v51, %v653_v50 }
  0x2b   : > { %v701_v7 = vpack.c.bf16 %v3641_v6, %v3641_v6  ;;  %3077 = vmatprep.subr.bf16.mxu1 %v3460_v3 }
  0x2c   : > { %3088 = vmatpush3.bf16.msra.mxu0 %v3650_v8 }
  0x2d   : > { %3074 = vmatmul.mubr.msk.bf16.vlgmr.msra.gmra.mxu1 %vm738_vm2, %v701_v7  ;;  %3101 = vmatprep.subr.bf16.mxu0 %v3460_v3 }
  0x2e   : > { %3078 = vmatpush3.bf16.msra.mxu1 %v3654_v9  ;;  %3081 = vmatprep.mubr.msk.bf16.mxu1 %vm3461_vm1, %v3460_v3 }
  0x2f   : > { %3079 = vmatprep.subr.bf16.mxu1 %v3460_v3  ;;  %3090 = vmatmul.mubr.msk.bf16.vlgmr.msra.gmra.mxu0 %vm738_vm2, %v701_v7 }
  0x30   : > { %3103 = vmatprep.mubr.msk.bf16.mxu0 %vm3461_vm1, %v3460_v3 }
  0x32   : > { %3080 = vmatpush3.bf16.msra.mxu1 %v3659_v10 }
  0x33   : > { %3093 = vmatprep.subr.bf16.mxu1 %v3460_v3 }
  0x35   : > { %3082 = vmatmul.mubr.msk.bf16.vlgmr.msra.gmra.mxu1 %vm738_vm2, %v701_v7 }
  0x36   : > { %3094 = vmatpush3.bf16.msra.mxu1 %v3672_v11  ;;  %3097 = vmatprep.mubr.msk.bf16.mxu1 %vm3461_vm1, %v3460_v3 }
  0x37   : > { %3095 = vmatprep.subr.bf16.mxu1 %v3460_v3 }
  0x3a   : > { %3096 = vmatpush3.bf16.msra.mxu1 %v3678_v12 }
  0x3b   : > { %3107 = vmatprep.subr.bf16.mxu1 %v3460_v3 }
  0x3d   : > { %3098 = vmatmul.mubr.msk.bf16.vlgmr.msra.gmra.mxu1 %vm738_vm2, %v701_v7 }
  0x3e   : > { %3109 = vmatprep.mubr.msk.bf16.mxu1 %vm3461_vm1, %v3460_v3 }
  0xed   : > { %v776_v14 = vpop.f32.mrf.mxu1 }
  0xee   : > { %v777_v16 = vadd.f32 %v3689_v13, %v776_v14 }
  0xef   : > { %v3075_v17 = vpop.f32.mrf.mxu1  ;;  %v880_v18 = vpop.f32.mrf.mxu0 }
  0xf0   : > { %v3695_v19 = vpack.c.bf16 %v777_v16, %v777_v16  ;;  %v881_v20 = vadd.f32 %v3692_v15, %v880_v18 }
  0xf1   : > { %v779_v21 = vpop.f32.mrf.mxu1  ;;  %v3091_v22 = vpop.f32.mrf.mxu0 }
  0xf2   : > { %943 = vrot.lane.b32.xlu0 %v3695_v19, %s3462_s18  ;;  %v3700_v23 = vpack.c.bf16 %v881_v20, %v881_v20 }
  0xf3   : > { %v3076_v24 = vpop.f32.mrf.mxu1  ;;  %v883_v26 = vpop.f32.mrf.mxu0 }
  0xf4   : > { %1042 = vrot.lane.b32.xlu1 %v3700_v23, %s3462_s18 }
  0xf5   : > { %v828_v27 = vpop.f32.mrf.mxu1  ;;  %v3092_v28 = vpop.f32.mrf.mxu0 }
  0xf6   : > { %v829_v29 = vadd.f32 %v3703_v25, %v828_v27 }
  0xf7   : > { %v3083_v30 = vpop.f32.mrf.mxu1 }
  0xf8   : > { %v3708_v31 = vpack.c.bf16 %v829_v29, %v829_v29 }
  0xf9   : > { %v831_v32 = vpop.f32.mrf.mxu1 }
  0xfa   : > { %993 = vrot.lane.b32.xlu0 %v3708_v31, %s3462_s18 }
  0xfb   : > { %v3084_v33 = vpop.f32.mrf.mxu1 }
  0xfd   : > { %v932_v35 = vpop.f32.mrf.mxu1 }
  0xfe   : > { %v933_v36 = vadd.f32 %v3713_v34, %v932_v35 }
  0xff   : > { %v3099_v37 = vpop.f32.mrf.mxu1 }
 0x100   : > { %v3716_v38 = vpack.c.bf16 %v933_v36, %v933_v36 }
 0x101   : > { %v935_v39 = vpop.f32.mrf.mxu1 }
 0x102   : > { %1091 = vrot.lane.b32.xlu1 %v3716_v38, %s3462_s18 }
 0x103   : > { %v3100_v40 = vpop.f32.mrf.mxu1 }
 0x164   : > { %v944_v41 = vpop.permute.xlu0 %943 }
 0x165   : > { %v950_v42 = vsel %vm945_vm3, %v944_v41, 0 }
 0x166   : > { %3102 = vmatpush3.bf16.xpose.msra.mxu0 %v950_v42  ;;  %v1043_v43 = vpop.permute.xlu1 %1042 }
 0x167   : > { %3113 = vmatprep.subr.bf16.mxu0 %v3460_v3  ;;  %v1048_v44 = vsel %vm945_vm3, %v1043_v43, 0 }
 0x16c   : > { %v994_v45 = vpop.permute.xlu0 %993 }
 0x16d   : > { %v999_v46 = vsel %vm945_vm3, %v994_v45, 0  ;;  %3104 = vmatmul.mubr.msk.bf16.vlgmr.msra.gmra.mxu0 %vm945_vm3, %v3695_v19 }
 0x16e   : > { %3108 = vmatpush3.bf16.xpose.msra.mxu1 %v999_v46  ;;  %3114 = vmatpush3.bf16.xpose.msra.mxu0 %v1048_v44 }
 0x16f   : > { %3115 = vmatprep.mubr.msk.bf16.mxu0 %vm3461_vm1, %v3460_v3  ;;  %3119 = vmatprep.subr.bf16.mxu1 %v3460_v3 }
 0x170   : > { %3125 = vmatprep.subr.bf16.mxu0 %v3460_v3 }
 0x174   : > { %v1092_v47 = vpop.permute.xlu1 %1091 }
 0x175   : > { %v1097_v48 = vsel %vm945_vm3, %v1092_v47, 0  ;;  %3110 = vmatmul.mubr.msk.bf16.vlgmr.msra.gmra.mxu1 %vm945_vm3, %v3708_v31  ;;  %3116 = vmatmul.mubr.msk.bf16.vlgmr.msra.gmra.mxu0 %vm945_vm3, %v3700_v23 }
 0x176   : > { %3120 = vmatpush3.bf16.xpose.msra.mxu1 %v1097_v48  ;;  %3121 = vmatprep.mubr.msk.bf16.mxu1 %vm3461_vm1, %v3460_v3 }
 0x177   : > { %3127 = vmatprep.mubr.msk.bf16.mxu0 %vm3461_vm1, %v3460_v3  ;;  %3131 = vmatprep.subr.bf16.mxu1 %v3460_v3 }
 0x17d   : > { %3122 = vmatmul.mubr.msk.bf16.vlgmr.msra.gmra.mxu1 %vm945_vm3, %v3716_v38 }
 0x17e   : > { %3133 = vmatprep.mubr.msk.bf16.mxu1 %vm3461_vm1, %v3460_v3 }
 0x22d   : > { %v986_v53 = vpop.f32.mrf.mxu0 }
 0x22e   : > { %v1141_v54 = vsel %vm3744_vm4, %v986_v53, -1e+30 }
 0x22f   : > { %v3105_v55 = vpop.f32.mrf.mxu0  ;;  %v1145_v56 = vsel %vm945_vm3, %v1141_v54, -inf }
 0x230   : > { %1146 = vmax.xlane.f32.xlu0 %v1145_v56 }
 0x231   : > { %v989_v57 = vpop.f32.mrf.mxu0 }
 0x233   : > { %v3106_v58 = vpop.f32.mrf.mxu0 }
 0x235   : > { %v1035_v59 = vpop.f32.mrf.mxu1  ;;  %v1084_v60 = vpop.f32.mrf.mxu0 }
 0x236   : > { %v1142_v61 = vsel %vm3744_vm4, %v1035_v59, -1e+30  ;;  %v1143_v62 = vsel %vm3744_vm4, %v1084_v60, -1e+30 }
 0x237   : > { %v3111_v63 = vpop.f32.mrf.mxu1  ;;  %v3117_v0 = vpop.f32.mrf.mxu0  ;;  %v1148_v1 = vsel %vm945_vm3, %v1142_v61, -inf  ;;  %v1151_v7 = vsel %vm945_vm3, %v1143_v62, -inf }
 0x238   : > { %1149 = vmax.xlane.f32.xlu1 %v1148_v1  ;;  %1152 = vmax.xlane.f32.xlu0 %v1151_v7 }
 0x239   : > { %v1038_v14 = vpop.f32.mrf.mxu1  ;;  %v1087_v16 = vpop.f32.mrf.mxu0 }
 0x23b   : > { %v3112_v17 = vpop.f32.mrf.mxu1  ;;  %v3118_v18 = vpop.f32.mrf.mxu0 }
 0x23d   : > { %v1133_v20 = vpop.f32.mrf.mxu1 }
 0x23e   : > { %v1144_v21 = vsel %vm3744_vm4, %v1133_v20, -1e+30 }
 0x23f   : > { %v3123_v22 = vpop.f32.mrf.mxu1  ;;  %v1154_v24 = vsel %vm945_vm3, %v1144_v21, -inf }
 0x240   : > { %1155 = vmax.xlane.f32.xlu0 %v1154_v24  ;;  %v678_v24 = vld [vmem:[%s3582_s13 + $0x4] sm:$0xf] }
 0x241   : > { %v1136_v26 = vpop.f32.mrf.mxu1 }
 0x242   : > { %v3800_v26 = vsel %vm1198_vm5, %v678_v24, 0 }
 0x243   : > { %v3124_v27 = vpop.f32.mrf.mxu1 }
 0x244   : > { %v679_v27 = vld [vmem:[%s3582_s13 + $0x8] sm:$0xf] }
 0x249   : > { %1193 = vrot.lane.b32.xlu1 %v3695_v19, %s3463_s21 }
 0x2b9   : > { %v1147_v28 = vpop.xlane.xlu0 %1146 }
 0x2ba   : > { %v1157_v29 = vsub.f32 %v1141_v54, %v1147_v28 }
 0x2bc   : > { %v1161_v30 = vmul.f32 1.442695, %v1157_v29 }
 0x2be   : > { %3368 = vpow2.f32 %v1161_v30  ;;  %v3806_v30 = vsel %vm1198_vm5, %v679_v27, 0 }
 0x2c1   : > { %v1150_v32 = vpop.xlane.xlu1 %1149  ;;  %v1153_v33 = vpop.xlane.xlu0 %1152 }
 0x2c2   : > { %v1158_v35 = vsub.f32 %v1142_v61, %v1150_v32  ;;  %v1159_v36 = vsub.f32 %v1143_v62, %v1153_v33 }
 0x2c4   : > { %v1163_v37 = vmul.f32 1.442695, %v1158_v35  ;;  %v1165_v39 = vmul.f32 1.442695, %v1159_v36  ;;  %v680_v36 = vld [vmem:[%s3582_s13 + $0xc] sm:$0xf] }
 0x2c5   : > { %v1194_v40 = vpop.permute.xlu1 %1193 }
 0x2c6   : > { %3370 = vpow2.f32 %v1163_v37  ;;  %v1200_v41 = vsel %vm1198_vm5, %v1194_v40, 0 }
 0x2c7   : > { %3372 = vpow2.f32 %v1165_v39  ;;  %3126 = vmatpush3.bf16.msra.mxu0 %v1200_v41  ;;  %v3815_v41 = vsel %vm1198_vm5, %v680_v36, 0 }
 0x2c8   : > { %3137 = vmatprep.subr.bf16.mxu0 %v3460_v3 }
 0x2c9   : > { %v1156_v19 = vpop.xlane.xlu0 %1155 }
 0x2ca   : > { %v1160_v42 = vsub.f32 %v1144_v21, %v1156_v19  ;;  %v677_v21 = vld [vmem:[%s3582_s13] sm:$0xf] }
 0x2cb   : > { %v3369_v43 = vpop.eup %3368  ;;  %v3794_v22 = vsel %vm1198_vm5, %v677_v21, 0 }
 0x2cc   : > { %v1167_v44 = vmul.f32 1.442695, %v1160_v42  ;;  %v1169_v45 = vsel %vm945_vm3, %v3369_v43, 0.0 }
 0x2cd   : > { %1170 = vadd.xlane.f32.xlu1 %v1169_v45 }
 0x2ce   : > { %3374 = vpow2.f32 %v1167_v44 }
 0x2d3   : > { %v3371_v46 = vpop.eup %3370 }
 0x2d4   : > { %v3373_v47 = vpop.eup %3372  ;;  %v1172_v48 = vsel %vm945_vm3, %v3371_v46, 0.0 }
 0x2d5   : > { %1173 = vadd.xlane.f32.xlu0 %v1172_v48  ;;  %v1175_v49 = vsel %vm945_vm3, %v3373_v47, 0.0 }
 0x2d6   : > { %1176 = vadd.xlane.f32.xlu1 %v1175_v49 }
 0x2db   : > { %v3375_v50 = vpop.eup %3374 }
 0x2dc   : > { %v1178_v51 = vsel %vm945_vm3, %v3375_v50, 0.0 }
 0x2dd   : > { %1179 = vadd.xlane.f32.xlu0 %v1178_v51 }
 0x2e7   : > { %1290 = vrot.lane.b32.xlu1 %v3700_v23, %s3463_s21 }
 0x2eb   : > { %1338 = vrot.lane.b32.xlu1 %v3716_v38, %s3463_s21 }
 0x2f3   : > { %1242 = vrot.lane.b32.xlu0 %v3708_v31, %s3463_s21 }
 0x356   : > { %v1171_v53 = vpop.xlane.xlu1 %1170 }
 0x357   : > { %3376 = vrcp.f32 %v1171_v53 }
 0x35e   : > { %v1174_v54 = vpop.xlane.xlu0 %1173 }
 0x35f   : > { %v1177_v55 = vpop.xlane.xlu1 %1176  ;;  %3378 = vrcp.f32 %v1174_v54 }
 0x360   : > { %3380 = vrcp.f32 %v1177_v55 }
 0x363   : > { %v1291_v58 = vpop.permute.xlu1 %1290 }
 0x364   : > { %v3377_v56 = vpop.eup %3376  ;;  %v1296_v23 = vsel %vm1198_vm5, %v1291_v58, 0 }
 0x365   : > { %v1185_v57 = vmul.f32 %v3377_v56, %v3369_v43 }
 0x366   : > { %v1180_v59 = vpop.xlane.xlu0 %1179 }
 0x367   : > { %3382 = vrcp.f32 %v1180_v59  ;;  %v1189_v60 = vpack.c.bf16 %v1185_v57, %v1185_v57  ;;  %v1339_v0 = vpop.permute.xlu1 %1338 }
 0x368   : > { %v1344_v16 = vsel %vm1198_vm5, %v1339_v0, 0 }
 0x369   : > { %3128 = vmatmul.mubr.msk.bf16.vlgmr.msra.gmra.mxu0 %vm945_vm3, %v1189_v60 }
 0x36a   : > { %3138 = vmatpush3.bf16.msra.mxu0 %v1296_v23  ;;  %v1243_v38 = vpop.permute.xlu0 %1242  ;;  %3139 = vmatprep.mubr.msk.bf16.mxu0 %vm3461_vm1, %v3460_v3 }
 0x36b   : > { %v1248_v31 = vsel %vm1198_vm5, %v1243_v38, 0  ;;  %3149 = vmatprep.subr.bf16.mxu0 %v3460_v3 }
 0x36c   : > { %v3379_v61 = vpop.eup %3378  ;;  %3132 = vmatpush3.bf16.msra.mxu1 %v1248_v31 }
 0x36d   : > { %v3381_v62 = vpop.eup %3380  ;;  %3143 = vmatprep.subr.bf16.mxu1 %v3460_v3  ;;  %v1186_v63 = vmul.f32 %v3379_v61, %v3371_v46 }
 0x36e   : > { %v1187_v1 = vmul.f32 %v3381_v62, %v3373_v47 }
 0x36f   : > { %v1190_v7 = vpack.c.bf16 %v1186_v63, %v1186_v63 }
 0x370   : > { %v1191_v14 = vpack.c.bf16 %v1187_v1, %v1187_v1 }
 0x371   : > { %3134 = vmatmul.mubr.msk.bf16.vlgmr.msra.gmra.mxu1 %vm945_vm3, %v1190_v7 }
 0x372   : > { %3140 = vmatmul.mubr.msk.bf16.vlgmr.msra.gmra.mxu0 %vm945_vm3, %v1191_v14  ;;  %3144 = vmatpush3.bf16.msra.mxu1 %v1344_v16 }
 0x373   : > { %3145 = vmatprep.mubr.msk.bf16.mxu1 %vm3461_vm1, %v3460_v3  ;;  %3151 = vmatprep.mubr.msk.bf16.mxu0 %vm3461_vm1, %v3460_v3 }
 0x374   : > { %v3383_v17 = vpop.eup %3382  ;;  %3155 = vmatprep.subr.bf16.mxu1 %v3460_v3  ;;  %3150 = vmatpush3.bf16.msra.mxu0 %v3794_v22 }
 0x375   : > { %v1188_v18 = vmul.f32 %v3383_v17, %v3375_v50  ;;  %3161 = vmatprep.subr.bf16.mxu0 %v3460_v3  ;;  %v3836_v17 = vld [vmem:[%s4150_s0] ss:$0 sm:$0xff] }
 0x377   : > { %v1192_v20 = vpack.c.bf16 %v1188_v18, %v1188_v18 }
 0x379   : > { %3146 = vmatmul.mubr.msk.bf16.vlgmr.msra.gmra.mxu1 %vm945_vm3, %v1192_v20 }
 0x37a   : > { %3157 = vmatprep.mubr.msk.bf16.mxu1 %vm3461_vm1, %v3460_v3  ;;  %3156 = vmatpush3.bf16.msra.mxu1 %v3800_v26 }
 0x37b   : > { %3167 = vmatprep.subr.bf16.mxu1 %v3460_v3 }
 0x429   : > { %v1236_v28 = vpop.f32.mrf.mxu0 }
 0x42a   : > { %v1386_v29 = vpack.c.bf16 %v1236_v28, %v1236_v28 }
 0x42b   : > { %v3129_v32 = vpop.f32.mrf.mxu0 }
 0x42c   : > { %3152 = vmatmul.mubr.msk.bf16.vlgmr.msra.gmra.mxu0 %vm945_vm3, %v1386_v29 }
 0x42d   : > { %v1239_v33 = vpop.f32.mrf.mxu0  ;;  %3162 = vmatpush3.bf16.msra.mxu0 %v3806_v30  ;;  %3163 = vmatprep.mubr.msk.bf16.mxu0 %vm3461_vm1, %v3460_v3 }
 0x42e   : > { %3173 = vmatprep.subr.bf16.mxu0 %v3460_v3 }
 0x42f   : > { %v3130_v35 = vpop.f32.mrf.mxu0 }
 0x431   : > { %v1284_v37 = vpop.f32.mrf.mxu1 }
 0x432   : > { %v1387_v39 = vpack.c.bf16 %v1284_v37, %v1284_v37  ;;  %v1332_v40 = vpop.f32.mrf.mxu0 }
 0x433   : > { %v1388_v19 = vpack.c.bf16 %v1332_v40, %v1332_v40  ;;  %v3135_v42 = vpop.f32.mrf.mxu1  ;;  %v3844_v40 = vld [vmem:[%s3595_s1 + $0x8] sm:$0xff]  }
 0x434   : > { %v3141_v43 = vpop.f32.mrf.mxu0  ;;  %3158 = vmatmul.mubr.msk.bf16.vlgmr.msra.gmra.mxu1 %vm945_vm3, %v1387_v39  ;;  %v3858_v42 = vld [vmem:[%s3605_s3 + $0x10] sm:$0xff]  }
 0x435   : > { %3164 = vmatmul.mubr.msk.bf16.vlgmr.msra.gmra.mxu0 %vm945_vm3, %v1388_v19  ;;  %v1287_v44 = vpop.f32.mrf.mxu1  ;;  %3168 = vmatpush3.bf16.msra.mxu1 %v3815_v41  ;;  %v3848_v19 = vld [vmem:[%s3595_s1] sm:$0xff]  }
 0x436   : > { %v1335_v45 = vpop.f32.mrf.mxu0  ;;  %3169 = vmatprep.mubr.msk.bf16.mxu1 %vm3461_vm1, %v3460_v3  ;;  %3177 = vmatprep.mubr.msk.bf16.mxu0 %vm3461_vm1, %v3460_v3 }
 0x437   : > { %v3136_v46 = vpop.f32.mrf.mxu1  ;;  %3181 = vmatprep.subr.bf16.mxu1 %v3460_v3  ;;  %3174 = vmatpush3.bf16.msra.mxu0 %v3844_v40 }
 0x438   : > { %v3142_v47 = vpop.f32.mrf.mxu0  ;;  %3175 = vmatprep.subr.bf16.mxu0 %v3460_v3 }
 0x439   : > { %v1380_v48 = vpop.f32.mrf.mxu1  ;;  %v3868_v47 = vld [vmem:[%s4151_s17] ss:$0 sm:$0xff] }
 0x43a   : > { %v1389_v49 = vpack.c.bf16 %v1380_v48, %v1380_v48 }
 0x43b   : > { %v3147_v50 = vpop.f32.mrf.mxu1  ;;  %3176 = vmatpush3.bf16.msra.mxu0 %v3848_v19 }
 0x43c   : > { %3170 = vmatmul.mubr.msk.bf16.vlgmr.msra.gmra.mxu1 %vm945_vm3, %v1389_v49  ;;  %3193 = vmatprep.subr.bf16.mxu0 %v3460_v3  ;;  %v3875_v49 = vld [vmem:[%s4152_s23] ss:$0 sm:$0xff] }
 0x43d   : > { %v1383_v51 = vpop.f32.mrf.mxu1  ;;  %3189 = vmatprep.mubr.msk.bf16.mxu1 %vm3461_vm1, %v3460_v3 }
 0x43f   : > { %v3148_v53 = vpop.f32.mrf.mxu1 }
 0x4ec   : > { %v1430_v54 = vpop.f32.mrf.mxu0 }
 0x4ed   : > { %v1574_v38 = vsel %vm738_vm2, %v1430_v54, 0.0  ;;  %v3887_v54 = vld [vmem:[#allocation2 + $0x8] sm:$0xff] }
 0x4ee   : > { %v3153_v55 = vpop.f32.mrf.mxu0 }
 0x4ef   : > { %v1786_v55 = vpack.c.bf16 %v3887_v54, %v3887_v54 }
 0x4f0   : > { %v1433_v56 = vpop.f32.mrf.mxu0 }
 0x4f2   : > { %v3154_v57 = vpop.f32.mrf.mxu0 }
 0x4f4   : > { %v1476_v58 = vpop.f32.mrf.mxu1 }
 0x4f5   : > { %v1575_v59 = vsel %vm738_vm2, %v1476_v58, 0.0  ;;  %v1522_v60 = vpop.f32.mrf.mxu0 }
 0x4f6   : > { %v3159_v23 = vpop.f32.mrf.mxu1  ;;  %v1576_v61 = vadd.f32 %v1575_v59, %v1574_v38  ;;  %v1577_v1 = vsel %vm738_vm2, %v1522_v60, 0.0 }
 0x4f7   : > { %v3165_v31 = vpop.f32.mrf.mxu0 }
 0x4f8   : > { %v1479_v62 = vpop.f32.mrf.mxu1  ;;  %v1578_v14 = vadd.f32 %v1577_v1, %v1576_v61 }
 0x4f9   : > { %v1525_v63 = vpop.f32.mrf.mxu0 }
 0x4fa   : > { %v3160_v0 = vpop.f32.mrf.mxu1 }
 0x4fb   : > { %v3166_v7 = vpop.f32.mrf.mxu0 }
 0x4fc   : > { %v1568_v16 = vpop.f32.mrf.mxu1 }
 0x4fd   : > { %v1579_v18 = vsel %vm738_vm2, %v1568_v16, 0.0 }
 0x4fe   : > { %v1580_v20 = vadd.f32 %v1579_v18, %v1578_v14  ;;  %v3171_v21 = vpop.f32.mrf.mxu1 }
 0x500   : > { %v1587_v24 = vadd.f32 %v3836_v17, %v1580_v20  ;;  %v1571_v27 = vpop.f32.mrf.mxu1 }
 0x502   : > { %v3172_v28 = vpop.f32.mrf.mxu1  ;;  %v1588_v29 = vadd.f32 %v1587_v24, %v3641_v6  ;;  %v3854_v6 = vld [vmem:[%s3605_s3 + $0x18] sm:$0xff]  }
 0x503   : > { %3182 = vmatpush3.bf16.msra.mxu1 %v3854_v6 }
 0x504   : > { %v1589_v32 = vsel %vm738_vm2, %v1588_v29, 0.0  ;;  %3183 = vmatprep.subr.bf16.mxu1 %v3460_v3 }
 0x505   : > { %1590 = vadd.xlane.f32.xlu0 %v1589_v32 }
 0x507   : > { %3184 = vmatpush3.bf16.msra.mxu1 %v3858_v42 }
 0x508   : > { %3185 = vmatprep.subr.bf16.mxu1 %v3460_v3 }
 0x58e   : > { %v1591_v33 = vpop.xlane.xlu0 %1590 }
 0x58f   : > { %v1593_v35 = vmul.f32 0.03125, %v1591_v33 }
 0x591   : > { %v1594_v36 = vsub.f32 %v1588_v29, %v1593_v35 }
 0x593   : > { %v1595_v37 = vmul.f32 %v1594_v36, %v1594_v36 }
 0x595   : > { %v1596_v39 = vsel %vm738_vm2, %v1595_v37, 0.0 }
 0x596   : > { %1597 = vadd.xlane.f32.xlu1 %v1596_v39 }
 0x61f   : > { %v1598_v43 = vpop.xlane.xlu1 %1597 }
 0x620   : > { %v1599_v44 = vmul.f32 0.03125, %v1598_v43 }
 0x622   : > { %v1600_v45 = vadd.f32 1e-05, %v1599_v44 }
 0x624   : > { %3384 = vrsqrt.f32 %v1600_v45 }
 0x631   : > { %v3385_v46 = vpop.eup %3384 }
 0x632   : > { %v1602_v48 = vmul.f32 %v3385_v46, %v1594_v36 }
 0x634   : > { %v1609_v50 = vmul.f32 %v3868_v47, %v1602_v48 }
 0x636   : > { %v3879_v51 = vadd.f32 %v3875_v49, %v1609_v50 }
 0x638   : > { %v1617_v53 = vpack.c.bf16 %v3879_v51, %v3879_v51 }
 0x63a   : > { %3178 = vmatmul.mubr.msk.bf16.vlgmr.msra.gmra.mxu0 %vm738_vm2, %v1617_v53 }
 0x63b   : > { %3194 = vmatpush3.bf16.msra.mxu0 %v3627_v2  ;;  %3197 = vmatprep.mubr.msk.bf16.mxu0 %vm3461_vm1, %v3460_v3  ;;  %v3912_v2 = vld [vmem:[%s3605_s3 + $0x8] sm:$0xff]  }
 0x63c   : > { %3195 = vmatprep.subr.bf16.mxu0 %v3460_v3  ;;  %3186 = vmatpush3.bf16.msra.mxu1 %v3912_v2 }
 0x63d   : > { %3187 = vmatprep.subr.bf16.mxu1 %v3460_v3 }
 0x63f   : > { %3196 = vmatpush3.bf16.msra.mxu0 %v3631_v4  ;;  %v3917_v4 = vld [vmem:[%s3605_s3] sm:$0xff]  }
 0x640   : > { %3201 = vmatprep.subr.bf16.mxu0 %v3460_v3  ;;  %3188 = vmatpush3.bf16.msra.mxu1 %v3917_v4 }
 0x641   : > { %3209 = vmatprep.subr.bf16.mxu1 %v3460_v3 }
 0x642   : > { %3198 = vmatmul.mubr.msk.bf16.vlgmr.msra.gmra.mxu0 %vm738_vm2, %v1786_v55 }
 0x643   : > { %3202 = vmatpush3.bf16.msra.mxu0 %v3654_v9  ;;  %3205 = vmatprep.mubr.msk.bf16.mxu0 %vm3461_vm1, %v3460_v3  ;;  %v3926_v9 = vld [vmem:[%s626_s28] ss:$0 sm:$0xff] }
 0x644   : > { %3203 = vmatprep.subr.bf16.mxu0 %v3460_v3 }
 0x647   : > { %3204 = vmatpush3.bf16.msra.mxu0 %v3659_v10 }
 0x648   : > { %3217 = vmatprep.subr.bf16.mxu0 %v3460_v3 }
 0x64a   : > { %3206 = vmatmul.mubr.msk.bf16.vlgmr.msra.gmra.mxu0 %vm738_vm2, %v1786_v55 }
 0x64b   : > { %3218 = vmatpush3.bf16.msra.mxu0 %v3672_v11  ;;  %3221 = vmatprep.mubr.msk.bf16.mxu0 %vm3461_vm1, %v3460_v3 }
 0x64c   : > { %3219 = vmatprep.subr.bf16.mxu0 %v3460_v3 }
 0x64f   : > { %3220 = vmatpush3.bf16.msra.mxu0 %v3678_v12 }
 0x650   : > { %3231 = vmatprep.subr.bf16.mxu0 %v3460_v3 }
 0x652   : > { %3222 = vmatmul.mubr.msk.bf16.vlgmr.msra.gmra.mxu0 %vm738_vm2, %v1786_v55 }
 0x653   : > { %3233 = vmatprep.mubr.msk.bf16.mxu0 %vm3461_vm1, %v3460_v3 }
 0x6fa   : > { %v1673_v10 = vpop.f32.mrf.mxu0 }
 0x6fb   : > { %v1674_v11 = vadd.f32 %v3926_v9, %v1673_v10 }
 0x6fc   : > { %v3179_v12 = vpop.f32.mrf.mxu0 }
 0x6fd   : > { %v1679_v56 = vmax.f32 %v1674_v11, 0.0 }
 0x6fe   : > { %v1676_v57 = vpop.f32.mrf.mxu0 }
 0x6ff   : > { %v1680_v58 = vpack.c.bf16 %v1679_v56, %v1679_v56 }
 0x700   : > { %v3180_v59 = vpop.f32.mrf.mxu0 }
 0x701   : > { %3190 = vmatmul.mubr.msk.bf16.vlgmr.msra.gmra.mxu1 %vm1711_vm6, %v1680_v58 }
 0x702   : > { %v1824_v60 = vpop.f32.mrf.mxu0  ;;  %3210 = vmatpush3.bf16.msra.mxu1 %v3638_v5  ;;  %3213 = vmatprep.mubr.msk.bf16.mxu1 %vm3461_vm1, %v3460_v3 }
 0x703   : > { %v1825_v23 = vadd.f32 %v3689_v13, %v1824_v60  ;;  %3211 = vmatprep.subr.bf16.mxu1 %v3460_v3 }
 0x704   : > { %v3199_v38 = vpop.f32.mrf.mxu0 }
 0x705   : > { %v3935_v31 = vpack.c.bf16 %v1825_v23, %v1825_v23 }
 0x706   : > { %v1827_v61 = vpop.f32.mrf.mxu0  ;;  %3212 = vmatpush3.bf16.msra.mxu1 %v3650_v8 }
 0x707   : > { %1955 = vrot.lane.b32.xlu0 %v3935_v31, %s3462_s18  ;;  %3225 = vmatprep.subr.bf16.mxu1 %v3460_v3 }
 0x708   : > { %v3200_v62 = vpop.f32.mrf.mxu0 }
 0x709   : > { %3214 = vmatmul.mubr.msk.bf16.vlgmr.msra.gmra.mxu1 %vm738_vm2, %v1786_v55 }
 0x70a   : > { %v1864_v5 = vpop.f32.mrf.mxu0  ;;  %3227 = vmatprep.mubr.msk.bf16.mxu1 %vm3461_vm1, %v3460_v3 }
 0x70b   : > { %v1865_v13 = vadd.f32 %v3703_v25, %v1864_v5 }
 0x70c   : > { %v3207_v63 = vpop.f32.mrf.mxu0 }
 0x70d   : > { %v3945_v0 = vpack.c.bf16 %v1865_v13, %v1865_v13 }
 0x70e   : > { %v1867_v1 = vpop.f32.mrf.mxu0 }
 0x70f   : > { %2004 = vrot.lane.b32.xlu1 %v3945_v0, %s3462_s18 }
 0x710   : > { %v3208_v8 = vpop.f32.mrf.mxu0 }
 0x712   : > { %v1944_v7 = vpop.f32.mrf.mxu0 }
 0x713   : > { %v1945_v14 = vadd.f32 %v3713_v34, %v1944_v7 }
 0x714   : > { %v3223_v16 = vpop.f32.mrf.mxu0 }
 0x715   : > { %v3950_v18 = vpack.c.bf16 %v1945_v14, %v1945_v14 }
 0x716   : > { %v1947_v20 = vpop.f32.mrf.mxu0 }
 0x717   : > { %2102 = vrot.lane.b32.xlu1 %v3950_v18, %s3462_s18 }
 0x718   : > { %v3224_v21 = vpop.f32.mrf.mxu0 }
 0x779   : > { %v1956_v25 = vpop.permute.xlu0 %1955 }
 0x77a   : > { %v1961_v24 = vsel %vm945_vm3, %v1956_v25, 0 }
 0x77b   : > { %3226 = vmatpush3.bf16.xpose.msra.mxu1 %v1961_v24 }
 0x77c   : > { %3237 = vmatprep.subr.bf16.mxu1 %v3460_v3 }
 0x781   : > { %v2005_v27 = vpop.permute.xlu1 %2004 }
 0x782   : > { %v2010_v28 = vsel %vm945_vm3, %v2005_v27, 0  ;;  %3228 = vmatmul.mubr.msk.bf16.vlgmr.msra.gmra.mxu1 %vm945_vm3, %v3935_v31 }
 0x783   : > { %3232 = vmatpush3.bf16.xpose.msra.mxu0 %v2010_v28  ;;  %3239 = vmatprep.mubr.msk.bf16.mxu1 %vm3461_vm1, %v3460_v3 }
 0x784   : > { %3243 = vmatprep.subr.bf16.mxu0 %v3460_v3 }
 0x789   : > { %v2103_v34 = vpop.permute.xlu1 %2102 }
 0x78a   : > { %3234 = vmatmul.mubr.msk.bf16.vlgmr.msra.gmra.mxu0 %vm945_vm3, %v3945_v0  ;;  %v2108_v29 = vsel %vm945_vm3, %v2103_v34, 0 }
 0x78b   : > { %3244 = vmatpush3.bf16.xpose.msra.mxu0 %v2108_v29  ;;  %3245 = vmatprep.mubr.msk.bf16.mxu0 %vm3461_vm1, %v3460_v3 }
 0x78c   : > { %3255 = vmatprep.subr.bf16.mxu0 %v3460_v3 }
 0x792   : > { %3246 = vmatmul.mubr.msk.bf16.vlgmr.msra.gmra.mxu0 %vm945_vm3, %v3950_v18 }
 0x793   : > { %3257 = vmatprep.mubr.msk.bf16.mxu0 %vm3461_vm1, %v3460_v3 }
 0x7c1   : > { %v3972_v32 = vpop.f32.mrf.mxu1 }
 0x7c3   : > { %v3191_v33 = vpop.f32.mrf.mxu1 }
 0x7c5   : > { %v1752_v35 = vpop.f32.mrf.mxu1 }
 0x7c7   : > { %v3192_v36 = vpop.f32.mrf.mxu1 }
 0x7c9   : > { %v1904_v37 = vpop.f32.mrf.mxu1 }
 0x7ca   : > { %v1905_v39 = vadd.f32 %v3692_v15, %v1904_v37 }
 0x7cb   : > { %v3215_v43 = vpop.f32.mrf.mxu1 }
 0x7cc   : > { %v1952_v44 = vpack.c.bf16 %v1905_v39, %v1905_v39 }
 0x7cd   : > { %v1907_v45 = vpop.f32.mrf.mxu1 }
 0x7ce   : > { %2053 = vrot.lane.b32.xlu0 %v1952_v44, %s3462_s18 }
 0x7cf   : > { %v3216_v46 = vpop.f32.mrf.mxu1 }
 0x840   : > { %v2054_v48 = vpop.permute.xlu0 %2053 }
 0x841   : > { %v2059_v50 = vsel %vm945_vm3, %v2054_v48, 0 }
 0x842   : > { %v1997_v53 = vpop.f32.mrf.mxu1  ;;  %3238 = vmatpush3.bf16.xpose.msra.mxu1 %v2059_v50 }
 0x843   : > { %v2150_v55 = vsel %vm3744_vm4, %v1997_v53, -1e+30  ;;  %3249 = vmatprep.subr.bf16.mxu1 %v3460_v3 }
 0x844   : > { %v2154_v10 = vsel %vm945_vm3, %v2150_v55, -inf  ;;  %v3229_v11 = vpop.f32.mrf.mxu1 }
 0x845   : > { %2155 = vmax.xlane.f32.xlu0 %v2154_v10 }
 0x846   : > { %v2000_v15 = vpop.f32.mrf.mxu1 }
 0x848   : > { %v3230_v12 = vpop.f32.mrf.mxu1 }
 0x849   : > { %3240 = vmatmul.mubr.msk.bf16.vlgmr.msra.gmra.mxu1 %vm945_vm3, %v1952_v44 }
 0x84a   : > { %v2046_v56 = vpop.f32.mrf.mxu0  ;;  %3251 = vmatprep.mubr.msk.bf16.mxu1 %vm3461_vm1, %v3460_v3 }
 0x84b   : > { %v2151_v57 = vsel %vm3744_vm4, %v2046_v56, -1e+30 }
 0x84c   : > { %v2157_v58 = vsel %vm945_vm3, %v2151_v57, -inf  ;;  %v3235_v59 = vpop.f32.mrf.mxu0 }
 0x84d   : > { %2158 = vmax.xlane.f32.xlu1 %v2157_v58 }
 0x84e   : > { %v2049_v60 = vpop.f32.mrf.mxu0 }
 0x850   : > { %v3236_v23 = vpop.f32.mrf.mxu0 }
 0x852   : > { %v2144_v38 = vpop.f32.mrf.mxu0 }
 0x853   : > { %v2153_v28 = vsel %vm3744_vm4, %v2144_v38, -1e+30 }
 0x854   : > { %v3247_v61 = vpop.f32.mrf.mxu0 }
 0x856   : > { %v2147_v62 = vpop.f32.mrf.mxu0 }
 0x858   : > { %v3248_v5 = vpop.f32.mrf.mxu0 }
 0x8ce   : > { %v2156_v13 = vpop.xlane.xlu0 %2155 }
 0x8cf   : > { %v2166_v63 = vsub.f32 %v2150_v55, %v2156_v13 }
 0x8d1   : > { %v2170_v1 = vmul.f32 1.442695, %v2166_v63 }
 0x8d3   : > { %3386 = vpow2.f32 %v2170_v1 }
 0x8d6   : > { %v2159_v14 = vpop.xlane.xlu1 %2158 }
 0x8d7   : > { %v2167_v16 = vsub.f32 %v2151_v57, %v2159_v14 }
 0x8d9   : > { %v2172_v20 = vmul.f32 1.442695, %v2167_v16 }
 0x8db   : > { %3388 = vpow2.f32 %v2172_v20 }
 0x8e0   : > { %v3387_v8 = vpop.eup %3386 }
 0x8e1   : > { %v2178_v7 = vsel %vm945_vm3, %v3387_v8, 0.0 }
 0x8e2   : > { %2179 = vadd.xlane.f32.xlu1 %v2178_v7 }
 0x8e8   : > { %v3389_v33 = vpop.eup %3388 }
 0x8e9   : > { %v2181_v35 = vsel %vm945_vm3, %v3389_v33, 0.0 }
 0x8f3   : > { %2202 = vrot.lane.b32.xlu1 %v3935_v31, %s3463_s21  ;;  %v2163_v31 = vsel %vm945_vm3, %v2153_v28, -inf }
 0x8f7   : > { %2298 = vrot.lane.b32.xlu1 %v1952_v44, %s3463_s21 }
 0x909   : > { %v2095_v21 = vpop.f32.mrf.mxu1 }
 0x90a   : > { %v2152_v25 = vsel %vm3744_vm4, %v2095_v21, -1e+30 }
 0x90b   : > { %v3241_v24 = vpop.f32.mrf.mxu1  ;;  %v2160_v27 = vsel %vm945_vm3, %v2152_v25, -inf }
 0x90c   : > { %2161 = vmax.xlane.f32.xlu0 %v2160_v27 }
 0x90d   : > { %v2098_v34 = vpop.f32.mrf.mxu1 }
 0x90f   : > { %v3242_v29 = vpop.f32.mrf.mxu1 }
 0x910   : > { %2164 = vmax.xlane.f32.xlu0 %v2163_v31 }
 0x914   : > { %2182 = vadd.xlane.f32.xlu0 %v2181_v35 }
 0x96b   : > { %v2180_v36 = vpop.xlane.xlu1 %2179 }
 0x96c   : > { %3390 = vrcp.f32 %v2180_v36 }
 0x96f   : > { %v2203_v37 = vpop.permute.xlu1 %2202 }
 0x970   : > { %v2208_v39 = vsel %vm1198_vm5, %v2203_v37, 0 }
 0x971   : > { %3250 = vmatpush3.bf16.msra.mxu1 %v2208_v39 }
 0x972   : > { %3261 = vmatprep.subr.bf16.mxu1 %v3460_v3 }
 0x973   : > { %v2299_v44 = vpop.permute.xlu1 %2298 }
 0x974   : > { %v2304_v46 = vsel %vm1198_vm5, %v2299_v44, 0 }
 0x979   : > { %v3391_v52 = vpop.eup %3390 }
 0x97a   : > { %v2194_v43 = vmul.f32 %v3391_v52, %v3387_v8 }
 0x97c   : > { %v2198_v45 = vpack.c.bf16 %v2194_v43, %v2194_v43 }
 0x97e   : > { %3252 = vmatmul.mubr.msk.bf16.vlgmr.msra.gmra.mxu1 %vm945_vm3, %v2198_v45 }
 0x97f   : > { %3262 = vmatpush3.bf16.msra.mxu1 %v2304_v46  ;;  %3263 = vmatprep.mubr.msk.bf16.mxu1 %vm3461_vm1, %v3460_v3 }
 0x980   : > { %3273 = vmatprep.subr.bf16.mxu1 %v3460_v3 }
 0x995   : > { %v2162_v48 = vpop.xlane.xlu0 %2161 }
 0x996   : > { %v2168_v50 = vsub.f32 %v2152_v25, %v2162_v48 }
 0x998   : > { %v2174_v53 = vmul.f32 1.442695, %v2168_v50 }
 0x999   : > { %v2165_v55 = vpop.xlane.xlu0 %2164 }
 0x99a   : > { %3392 = vpow2.f32 %v2174_v53  ;;  %v2169_v10 = vsub.f32 %v2153_v28, %v2165_v55 }
 0x99c   : > { %v2176_v11 = vmul.f32 1.442695, %v2169_v10 }
 0x99d   : > { %v2183_v58 = vpop.xlane.xlu0 %2182 }
 0x99e   : > { %3394 = vpow2.f32 %v2176_v11 }
 0x99f   : > { %3396 = vrcp.f32 %v2183_v58 }
 0x9a7   : > { %v3393_v15 = vpop.eup %3392 }
 0x9a8   : > { %v2184_v12 = vsel %vm945_vm3, %v3393_v15, 0.0 }
 0x9a9   : > { %2185 = vadd.xlane.f32.xlu1 %v2184_v12 }
 0x9ab   : > { %v3395_v56 = vpop.eup %3394 }
 0x9ac   : > { %v2187_v57 = vsel %vm945_vm3, %v3395_v56, 0.0  ;;  %v3397_v60 = vpop.eup %3396 }
 0x9ad   : > { %2188 = vadd.xlane.f32.xlu0 %v2187_v57  ;;  %v2195_v38 = vmul.f32 %v3397_v60, %v3389_v33 }
 0x9af   : > { %v2199_v13 = vpack.c.bf16 %v2195_v38, %v2195_v38 }
 0x9ba   : > { %2346 = vrot.lane.b32.xlu1 %v3950_v18, %s3463_s21 }
 0x9c3   : > { %2250 = vrot.lane.b32.xlu0 %v3945_v0, %s3463_s21 }
 0xa32   : > { %v2186_v59 = vpop.xlane.xlu1 %2185 }
 0xa33   : > { %3398 = vrcp.f32 %v2186_v59 }
 0xa36   : > { %v2189_v23 = vpop.xlane.xlu0 %2188  ;;  %v2347_v5 = vpop.permute.xlu1 %2346 }
 0xa37   : > { %3400 = vrcp.f32 %v2189_v23  ;;  %v2352_v63 = vsel %vm1198_vm5, %v2347_v5, 0 }
 0xa3a   : > { %v2251_v61 = vpop.permute.xlu0 %2250 }
 0xa3b   : > { %v2256_v62 = vsel %vm1198_vm5, %v2251_v61, 0 }
 0xa3c   : > { %3256 = vmatpush3.bf16.msra.mxu0 %v2256_v62 }
 0xa3d   : > { %3267 = vmatprep.subr.bf16.mxu0 %v3460_v3 }
 0xa3e   : > { %v2244_v18 = vpop.f32.mrf.mxu1 }
 0xa3f   : > { %3258 = vmatmul.mubr.msk.bf16.vlgmr.msra.gmra.mxu0 %vm945_vm3, %v2199_v13  ;;  %v2394_v24 = vpack.c.bf16 %v2244_v18, %v2244_v18 }
 0xa40   : > { %v3399_v0 = vpop.eup %3398  ;;  %v3253_v1 = vpop.f32.mrf.mxu1  ;;  %3268 = vmatpush3.bf16.msra.mxu0 %v2352_v63  ;;  %3269 = vmatprep.mubr.msk.bf16.mxu0 %vm3461_vm1, %v3460_v3 }
 0xa41   : > { %v2196_v8 = vmul.f32 %v3399_v0, %v3393_v15  ;;  %3279 = vmatprep.subr.bf16.mxu0 %v3460_v3 }
 0xa42   : > { %v2247_v7 = vpop.f32.mrf.mxu1 }
 0xa43   : > { %v2200_v14 = vpack.c.bf16 %v2196_v8, %v2196_v8 }
 0xa44   : > { %v3401_v16 = vpop.eup %3400  ;;  %v3254_v20 = vpop.f32.mrf.mxu1 }
 0xa45   : > { %3264 = vmatmul.mubr.msk.bf16.vlgmr.msra.gmra.mxu1 %vm945_vm3, %v2200_v14  ;;  %v2197_v21 = vmul.f32 %v3401_v16, %v3395_v56 }
 0xa46   : > { %3274 = vmatpush3.bf16.msra.mxu1 %v3794_v22  ;;  %3275 = vmatprep.mubr.msk.bf16.mxu1 %vm3461_vm1, %v3460_v3 }
 0xa47   : > { %v2201_v25 = vpack.c.bf16 %v2197_v21, %v2197_v21  ;;  %3285 = vmatprep.subr.bf16.mxu1 %v3460_v3 }
 0xa49   : > { %3270 = vmatmul.mubr.msk.bf16.vlgmr.msra.gmra.mxu0 %vm945_vm3, %v2201_v25 }
 0xa4a   : > { %3280 = vmatpush3.bf16.msra.mxu0 %v3800_v26  ;;  %3281 = vmatprep.mubr.msk.bf16.mxu0 %vm3461_vm1, %v3460_v3 }
 0xa4b   : > { %3291 = vmatprep.subr.bf16.mxu0 %v3460_v3 }
 0xa4d   : > { %3276 = vmatmul.mubr.msk.bf16.vlgmr.msra.gmra.mxu1 %vm945_vm3, %v2394_v24 }
 0xa4e   : > { %3286 = vmatpush3.bf16.msra.mxu1 %v3806_v30  ;;  %3287 = vmatprep.mubr.msk.bf16.mxu1 %vm3461_vm1, %v3460_v3 }
 0xa4f   : > { %3297 = vmatprep.subr.bf16.mxu1 %v3460_v3 }
 0xaff   : > { %v2292_v22 = vpop.f32.mrf.mxu0 }
 0xb00   : > { %v2395_v27 = vpack.c.bf16 %v2292_v22, %v2292_v22 }
 0xb01   : > { %v3259_v28 = vpop.f32.mrf.mxu0 }
 0xb02   : > { %3282 = vmatmul.mubr.msk.bf16.vlgmr.msra.gmra.mxu0 %vm945_vm3, %v2395_v27 }
 0xb03   : > { %v2295_v26 = vpop.f32.mrf.mxu0  ;;  %3292 = vmatpush3.bf16.msra.mxu0 %v3815_v41  ;;  %3293 = vmatprep.mubr.msk.bf16.mxu0 %vm3461_vm1, %v3460_v3 }
 0xb04   : > { %3305 = vmatprep.subr.bf16.mxu0 %v3460_v3 }
 0xb05   : > { %v3260_v34 = vpop.f32.mrf.mxu0  ;;  %v2340_v30 = vpop.f32.mrf.mxu1 }
 0xb06   : > { %v2396_v29 = vpack.c.bf16 %v2340_v30, %v2340_v30  ;;  %v2952_v34 = vld [vmem:[%s637_s15] ss:$0 sm:$0xff] }
 0xb07   : > { %v3265_v31 = vpop.f32.mrf.mxu1 }
 0xb08   : > { %3288 = vmatmul.mubr.msk.bf16.vlgmr.msra.gmra.mxu1 %vm945_vm3, %v2396_v29  ;;  %v2953_v31 = vld [vmem:[%s640_s14] ss:$0 sm:$0xff] }
 0xb09   : > { %v2343_v33 = vpop.f32.mrf.mxu1  ;;  %v2388_v35 = vpop.f32.mrf.mxu0  ;;  %3298 = vmatpush3.bf16.msra.mxu1 %v3844_v40  ;;  %3301 = vmatprep.mubr.msk.bf16.mxu1 %vm3461_vm1, %v3460_v3 }
 0xb0a   : > { %v2397_v36 = vpack.c.bf16 %v2388_v35, %v2388_v35  ;;  %3299 = vmatprep.subr.bf16.mxu1 %v3460_v3 }
 0xb0b   : > { %v3266_v41 = vpop.f32.mrf.mxu1  ;;  %v3271_v37 = vpop.f32.mrf.mxu0 }
 0xb0c   : > { %3294 = vmatmul.mubr.msk.bf16.vlgmr.msra.gmra.mxu0 %vm945_vm3, %v2397_v36 }
 0xb0d   : > { %v2391_v39 = vpop.f32.mrf.mxu0  ;;  %v2435_v52 = vpop.f32.mrf.mxu1  ;;  %3300 = vmatpush3.bf16.msra.mxu1 %v3848_v19  ;;  %3306 = vmatpush3.bf16.msra.mxu0 %v3854_v6 }
 0xb0e   : > { %3307 = vmatprep.subr.bf16.mxu0 %v3460_v3  ;;  %3313 = vmatprep.mubr.msk.bf16.mxu0 %vm3461_vm1, %v3460_v3  ;;  %v2570_v55 = vsel %vm738_vm2, %v2435_v52, 0.0 }
 0xb0f   : > { %v3272_v40 = vpop.f32.mrf.mxu0  ;;  %v3277_v43 = vpop.f32.mrf.mxu1 }
 0xb11   : > { %v2438_v44 = vpop.f32.mrf.mxu1  ;;  %3308 = vmatpush3.bf16.msra.mxu0 %v3858_v42 }
 0xb12   : > { %3309 = vmatprep.subr.bf16.mxu0 %v3460_v3 }
 0xb13   : > { %v3278_v45 = vpop.f32.mrf.mxu1 }
 0xb15   : > { %3310 = vmatpush3.bf16.msra.mxu0 %v3912_v2 }
 0xb16   : > { %3311 = vmatprep.subr.bf16.mxu0 %v3460_v3  ;;  %v2946_v3 = vld [vmem:[%s634_s16] ss:$0 sm:$0xff] }
 0xb17   : > { %v1750_v59 = vadd.f32 %v2946_v3, %v3972_v32 }
 0xb19   : > { %3312 = vmatpush3.bf16.msra.mxu0 %v3917_v4  ;;  %v1755_v5 = vadd.f32 %v1750_v59, %v3879_v51 }
 0xb1b   : > { %v1756_v13 = vsel %vm738_vm2, %v1755_v5, 0.0 }
 0xbc2   : > { %v2478_v19 = vpop.f32.mrf.mxu0 }
 0xbc3   : > { %v2571_v48 = vsel %vm738_vm2, %v2478_v19, 0.0 }
 0xbc4   : > { %v3283_v6 = vpop.f32.mrf.mxu0  ;;  %v2572_v10 = vadd.f32 %v2571_v48, %v2570_v55 }
 0xbc6   : > { %v2481_v46 = vpop.f32.mrf.mxu0 }
 0xbc8   : > { %v3284_v50 = vpop.f32.mrf.mxu0  ;;  %v2521_v53 = vpop.f32.mrf.mxu1 }
 0xbc9   : > { %v2573_v42 = vsel %vm738_vm2, %v2521_v53, 0.0 }
 0xbca   : > { %v3289_v11 = vpop.f32.mrf.mxu1  ;;  %v2574_v15 = vadd.f32 %v2573_v42, %v2572_v10 }
 0xbcc   : > { %v2524_v2 = vpop.f32.mrf.mxu1  ;;  %v2564_v12 = vpop.f32.mrf.mxu0 }
 0xbcd   : > { %v2575_v4 = vsel %vm738_vm2, %v2564_v12, 0.0 }
 0xbce   : > { %v2576_v56 = vadd.f32 %v2575_v4, %v2574_v15  ;;  %v3290_v57 = vpop.f32.mrf.mxu1  ;;  %v3295_v58 = vpop.f32.mrf.mxu0 }
 0xbd0   : > { %v2577_v60 = vadd.f32 %v3836_v17, %v2576_v56  ;;  %v2567_v23 = vpop.f32.mrf.mxu0 }
 0xbd2   : > { %v3296_v38 = vpop.f32.mrf.mxu0  ;;  %v2578_v61 = vadd.f32 %v2577_v60, %v3887_v54 }
 0xbd4   : > { %v2579_v62 = vsel %vm738_vm2, %v2578_v61, 0.0 }
 0xbd5   : > { %2580 = vadd.xlane.f32.xlu0 %v2579_v62 }
 0xbd9   : > { %1757 = vadd.xlane.f32.xlu0 %v1756_v13 }
 0xc5e   : > { %v2581_v18 = vpop.xlane.xlu0 %2580 }
 0xc5f   : > { %v2582_v63 = vmul.f32 0.03125, %v2581_v18 }
 0xc61   : > { %v2583_v0 = vsub.f32 %v2578_v61, %v2582_v63 }
 0xc62   : > { %v1758_v1 = vpop.xlane.xlu0 %1757 }
 0xc63   : > { %v1759_v8 = vmul.f32 0.03125, %v1758_v1  ;;  %v2584_v32 = vmul.f32 %v2583_v0, %v2583_v0 }
 0xc65   : > { %v1760_v7 = vsub.f32 %v1755_v5, %v1759_v8  ;;  %v2585_v17 = vsel %vm738_vm2, %v2584_v32, 0.0 }
 0xc66   : > { %2586 = vadd.xlane.f32.xlu1 %v2585_v17 }
 0xc67   : > { %v1761_v54 = vmul.f32 %v1760_v7, %v1760_v7 }
 0xc69   : > { %v1762_v14 = vsel %vm738_vm2, %v1761_v54, 0.0 }
 0xc6a   : > { %1763 = vadd.xlane.f32.xlu1 %v1762_v14 }
 0xcef   : > { %v2587_v51 = vpop.xlane.xlu1 %2586 }
 0xcf0   : > { %v2588_v16 = vmul.f32 0.03125, %v2587_v51 }
 0xcf2   : > { %v2589_v20 = vadd.f32 1e-05, %v2588_v16 }
 0xcf3   : > { %v1764_v21 = vpop.xlane.xlu1 %1763 }
 0xcf4   : > { %3402 = vrsqrt.f32 %v2589_v20  ;;  %v1765_v25 = vmul.f32 0.03125, %v1764_v21 }
 0xcf6   : > { %v1766_v24 = vadd.f32 1e-05, %v1765_v25 }
 0xcf8   : > { %3404 = vrsqrt.f32 %v1766_v24 }
 0xd01   : > { %v3403_v22 = vpop.eup %3402 }
 0xd02   : > { %v2591_v27 = vmul.f32 %v3403_v22, %v2583_v0 }
 0xd04   : > { %v2592_v28 = vmul.f32 %v3868_v47, %v2591_v27 }
 0xd05   : > { %v3405_v26 = vpop.eup %3404 }
 0xd06   : > { %v1768_v30 = vmul.f32 %v3405_v26, %v1760_v7  ;;  %v2593_v29 = vadd.f32 %v3875_v49, %v2592_v28 }
 0xd08   : > { %v1775_v33 = vmul.f32 %v2952_v34, %v1768_v30  ;;  %v2594_v35 = vpack.c.bf16 %v2593_v29, %v2593_v29 }
 0xd0a   : > { %v1782_v36 = vadd.f32 %v2953_v31, %v1775_v33  ;;  %3302 = vmatmul.mubr.msk.bf16.vlgmr.msra.gmra.mxu1 %vm738_vm2, %v2594_v35 }
 0xd0c   : > { %1783 = vst.msk [vmem:[#allocation2] sm:$0xff] %vm738_vm2, %v1782_v36 }
 0xdca   : > { %v2632_v47 = vpop.f32.mrf.mxu1 }
 0xdcb   : > { %v2633_v41 = vadd.f32 %v3926_v9, %v2632_v47 }
 0xdcc   : > { %v3303_v37 = vpop.f32.mrf.mxu1 }
 0xdcd   : > { %v2638_v39 = vmax.f32 %v2633_v41, 0.0 }
 0xdce   : > { %v2635_v52 = vpop.f32.mrf.mxu1 }
 0xdcf   : > { %v2639_v40 = vpack.c.bf16 %v2638_v39, %v2638_v39 }
 0xdd0   : > { %v3304_v49 = vpop.f32.mrf.mxu1 }
 0xdd1   : > { %3314 = vmatmul.mubr.msk.bf16.vlgmr.msra.gmra.mxu0 %vm1711_vm6, %v2639_v40 }
 0xe91   : > { %v2677_v43 = vpop.f32.mrf.mxu0 }
 0xe92   : > { %v2678_v44 = vadd.f32 %v2946_v3, %v2677_v43 }
 0xe93   : > { %v3315_v45 = vpop.f32.mrf.mxu0 }
 0xe94   : > { %v2683_v19 = vadd.f32 %v2678_v44, %v2593_v29 }
 0xe95   : > { %v2680_v6 = vpop.f32.mrf.mxu0 }
 0xe96   : > { %v2684_v46 = vsel %vm738_vm2, %v2683_v19, 0.0 }
 0xe97   : > { %2685 = vadd.xlane.f32.xlu0 %v2684_v46  ;;  %v3316_v48 = vpop.f32.mrf.mxu0 }
 0xf20   : > { %v2686_v50 = vpop.xlane.xlu0 %2685 }
 0xf21   : > { %v2687_v53 = vmul.f32 0.03125, %v2686_v50 }
 0xf23   : > { %v2688_v55 = vsub.f32 %v2683_v19, %v2687_v53 }
 0xf25   : > { %v2689_v9 = vmul.f32 %v2688_v55, %v2688_v55 }
 0xf27   : > { %v2690_v42 = vsel %vm738_vm2, %v2689_v9, 0.0 }
 0xf28   : > { %2691 = vadd.xlane.f32.xlu0 %v2690_v42 }
 0xfb1   : > { %v2692_v10 = vpop.xlane.xlu0 %2691 }
 0xfb2   : > { %v2693_v11 = vmul.f32 0.03125, %v2692_v10 }
 0xfb4   : > { %v2694_v15 = vadd.f32 1e-05, %v2693_v11 }
 0xfb6   : > { %3406 = vrsqrt.f32 %v2694_v15 }
 0xfc3   : > { %v3407_v2 = vpop.eup %3406 }
 0xfc4   : > { %v2696_v12 = vmul.f32 %v3407_v2, %v2688_v55 }
 0xfc6   : > { %v2697_v3 = vmul.f32 %v2952_v34, %v2696_v12  ;;  %2703 = sbr.rel (%p2972_p6) target bundleno = 4051 (0xfd3), region = 80 }
 0xfc8   : > { %v2698_v4 = vadd.f32 %v2953_v31, %v2697_v3 }
 0xfca   : > { %2699 = vst.msk [vmem:[#allocation2 + $0x8] sm:$0xff] %vm738_vm2, %v2698_v4 }
 0xfcb   : > { %v2704_v56 = vld [vmem:[#allocation2] sm:$0xff] }
 0xfcc   : > { %2706 = vst.msk [vmem:[#allocation3] sm:$0xff] %vm738_vm2, %v2704_v56 }
 0xfd1   : > { %v2705_v57 = vld [vmem:[#allocation2 + $0x8] sm:$0xff] }
 0xfd2   : > { %2707 = vst.msk [vmem:[#allocation3 + $0x8] sm:$0xff] %vm738_vm2, %v2705_v57 }
 0xfd3 PF: > { %s4153_s30 = sld [smem:[#allocation7_spill]]  ;;  %s3464_s13 = smov [#allocation3]  }
 0xfd4   : > { %s2717_s19 = sshll.u32 %s3464_s13, 4  ;;  %s2718_s19 = int_to_ptr.vmem [resolvable:$true] %s2717_s19 }
 0xfd5   : > { %s3408_s0 = scalar_lea.vmem %s2718_s19, 256  ;;  %p3415_p11 = scmp.lt.s32.totalorder %s2718_s19, %s2718_s19 }
 0xfd6   : > { %p3409_p8 = scmp.ne.s32.totalorder %s2718_s19, %s3408_s0  ;;  %p3416_p12 = scmp.lt.s32.totalorder %s3408_s0, %s3408_s0 }
 0xfd8   : > { %p3417_p13 = por %p3416_p12, %p3415_p11 }
 0xfd9   : > { %s4154_s14 = sadd.s32 4294967295, %s4153_s30  }
 0xfda   : > { %p4095_p7 = scmp.eq.s32.totalorder %s4154_s14, 1 }
 0xfdc   : > { %p3410_p9 = pnand %p3409_p8, %p4095_p7 }
 0xfde   : > { %p3411_p10 = pneg %p3410_p9 }
 0xfe0   : > { %p3418_p0 = pnand %p3417_p13, %p3411_p10 }
 0xfe2   : > { %3421 = shalt.err (!%p3418_p0)
}
 0xfe3   : > { %s3465_s25 = smov 128   ;;  %s3466_s1 = smov 8  }
 0xfe4   : > { %s4156_s22 = sld [smem:[#allocation13_spill]] }
 0xfea   : > { %3318 = dma.vmem_to_hbm [thread:$0]  (%p4095_p7), %s2718_s19, 256, %s4156_s22, [#allocation4], %s3465_s25, %s3465_s25, %s3466_s1  }
 0xfeb   : > { %3445 = dma.done.wait (%p4095_p7), [#allocation4], 256  }
 0xfec   : > { %3447 = vsyncadd (%p4095_p7), [#allocation4], 4294967040 }
 0xfed PF: > { %s4157_s20 = sld [smem:[#allocation7_spill]] }
 0xfee   : > { %s4158_s25 = sld [smem:[#allocation6_spill]] }
 0xfef   : > { %s4159_s26 = sld [smem:[#allocation8_spill]] }
 0xff3   : > { %s24_s27 = sadd.s32 1, %s4157_s20  }
 0xff4   : > { %p21_p1 = scmp.ge.s32.totalorder %s24_s27, 4  }
 0xff6   :  { %23 = sbr.rel (!%p21_p1) target bundleno = 8 (0x8), region = 145 }
 0xffb   :  { %2733 = vsyncpa [#allocation4], 1 }
 0xffc   :  { %2735 = vsyncpa [#allocation4 + $0x1], 1 }

</bundles_post_ra>
